<compile_context>
chip_gen: v5e
topology: v5e:2x2
jax: 0.10.0
libtpu: 0.0.40
codegen_flags: <defaults>
</compile_context>

<pallas_src>
import functools

import jax
import jax.numpy as jnp
from jax.experimental import pallas as pl
from jax.experimental.pallas import tpu as pltpu


# --------------------------------------------------------------------------- #
# Pallas kernel: the full TransformerMEncoderLayer stack (pre-LN), one layer
# per grid step, activations carried in VMEM scratch across layers.
# --------------------------------------------------------------------------- #
def _encoder_stack_kernel(x0_ref, bias_ref, wattn_ref, battn_ref, wout_ref,
                          vec_ref, wfc1_ref, bfc1_ref, wfc2_ref,
                          out_ref, x_vmem,
                          *, num_graphs, tokens, num_heads, head_dim):
    B, T, H, D = num_graphs, tokens, num_heads, head_dim
    C = H * D

    # First layer: load the embedded input into the resident activation buffer.
    @pl.when(pl.program_id(0) == 0)
    def _():
        x_vmem[...] = x0_ref[...]

    x = x_vmem[...]                                   # (B*T, C) float32

    # Packed per-layer C-wide vectors: rows = [o_b, ln1_g, ln1_b, ln2_g, ln2_b, fc2_b, 0, 0]
    vecs = vec_ref[0]                                 # (8, C) float32
    o_b, ln1_g, ln1_b = vecs[0:1], vecs[1:2], vecs[2:3]
    ln2_g, ln2_b, fc2_b = vecs[3:4], vecs[4:5], vecs[5:6]

    def layer_norm(v, g, b):
        mu = jnp.mean(v, axis=-1, keepdims=True)
        var = jnp.mean(jnp.square(v - mu), axis=-1, keepdims=True)
        return (v - mu) * jax.lax.rsqrt(var + 1e-5) * g + b

    # ----------------- self-attention block (pre-LN) ----------------- #
    h1 = layer_norm(x, ln1_g, ln1_b).astype(jnp.bfloat16)
    # Fused q/k/v projection: one (B*T,C) x (C,3C) matmul; q part is pre-scaled.
    qkv = (jnp.dot(h1, wattn_ref[0], preferred_element_type=jnp.float32)
           + battn_ref[0])                            # (B*T, 3C) f32
    q = qkv[:, 0 * C:1 * C].astype(jnp.bfloat16)      # (B*T, C)
    k_t = qkv[:, 1 * C:2 * C].T.astype(jnp.bfloat16)  # (C, B*T) (single transpose)
    v = qkv[:, 2 * C:3 * C].astype(jnp.bfloat16)      # (B*T, C)

    ctx_graphs = []
    for b in range(B):                                # static loop over graphs
        rows = slice(b * T, (b + 1) * T)
        ctx_heads = []
        for hh in range(H):                           # static loop over heads
            cols = slice(hh * D, (hh + 1) * D)
            s = jnp.dot(q[rows, cols], k_t[cols, rows],
                        preferred_element_type=jnp.float32)       # (T, T) f32
            s = s + bias_ref[b, hh]                   # bias (+ key-pad mask) pre-added
            m = jnp.max(s, axis=-1, keepdims=True)
            p = jnp.exp(s - m)                        # padded keys -> exactly 0
            p = p * pl.reciprocal(jnp.sum(p, axis=-1, keepdims=True), approx=True)
            ctx_heads.append(jnp.dot(p.astype(jnp.bfloat16), v[rows, cols],
                                     preferred_element_type=jnp.float32))
        ctx_graphs.append(jnp.concatenate(ctx_heads, axis=-1))     # (T, C)
    ctx = jnp.concatenate(ctx_graphs, axis=0)         # (B*T, C)

    # Single fused output projection for all graphs / heads.
    attn = (jnp.dot(ctx.astype(jnp.bfloat16), wout_ref[0],
                    preferred_element_type=jnp.float32) + o_b)
    x = x + attn

    # ----------------- feed-forward block (pre-LN) ----------------- #
    h2 = layer_norm(x, ln2_g, ln2_b).astype(jnp.bfloat16)
    h2 = (jnp.dot(h2, wfc1_ref[0], preferred_element_type=jnp.float32)
          + bfc1_ref[0])
    h2 = jnp.maximum(h2, 0.0)                         # relu (f32)
    h2 = (jnp.dot(h2.astype(jnp.bfloat16), wfc2_ref[0],
                  preferred_element_type=jnp.float32) + fc2_b)
    x = x + h2

    x_vmem[...] = x                                   # carry to next layer
    out_ref[0] = x                                    # this layer's inner state


def _pallas_encoder_stack(x_btc, attn_bias, stacked, num_heads):
    """Run all L encoder layers in one pallas_call. Returns (L, B, T, C) f32."""
    B, T, C = x_btc.shape
    L = stacked['w_attn'].shape[0]
    F = stacked['w_fc1'].shape[-1]
    BT = B * T
    x0 = x_btc.reshape(BT, C).astype(jnp.float32)

    kernel = functools.partial(_encoder_stack_kernel,
                               num_graphs=B, tokens=T,
                               num_heads=num_heads, head_dim=C // num_heads)
    out = pl.pallas_call(
        kernel,
        out_shape=jax.ShapeDtypeStruct((L, BT, C), jnp.float32),
        grid=(L,),
        in_specs=[
            pl.BlockSpec((BT, C), lambda l: (0, 0)),                      # x0 (resident)
            pl.BlockSpec((B, num_heads, T, T), lambda l: (0, 0, 0, 0)),   # bias (resident)
            pl.BlockSpec((1, C, 3 * C), lambda l: (l, 0, 0)),             # fused qkv weight
            pl.BlockSpec((1, 1, 3 * C), lambda l: (l, 0, 0)),             # fused qkv bias
            pl.BlockSpec((1, C, C), lambda l: (l, 0, 0)),                 # out proj weight
            pl.BlockSpec((1, 8, C), lambda l: (l, 0, 0)),                 # packed vectors
            pl.BlockSpec((1, C, F), lambda l: (l, 0, 0)),                 # fc1 weight
            pl.BlockSpec((1, 1, F), lambda l: (l, 0, 0)),                 # fc1 bias
            pl.BlockSpec((1, F, C), lambda l: (l, 0, 0)),                 # fc2 weight
        ],
        out_specs=pl.BlockSpec((1, BT, C), lambda l: (l, 0, 0)),
        scratch_shapes=[pltpu.VMEM((BT, C), jnp.float32)],
        compiler_params=pltpu.CompilerParams(
            dimension_semantics=("arbitrary",)),      # layer axis carries x in scratch
    )(x0, attn_bias, stacked['w_attn'], stacked['b_attn'], stacked['w_out'],
      stacked['vecs'], stacked['w_fc1'], stacked['b_fc1'], stacked['w_fc2'])
    return out.reshape(L, B, T, C)


def _prepare_stacked_params(layers, num_heads):
    """Fold q-scaling into q weights, fuse qkv, pack C-wide vectors, stack over L,
    and cast the big matmul operands to bf16 (f32 accumulation in-kernel)."""
    C = layers[0]['q_w'].shape[0]
    scale = float(C // num_heads) ** -0.5
    w_attn, b_attn, w_out, w_fc1, b_fc1, w_fc2, vecs = [], [], [], [], [], [], []
    for lp in layers:
        w_attn.append(jnp.concatenate(
            [lp['q_w'] * scale, lp['k_w'], lp['v_w']], axis=1))           # (C, 3C)
        b_attn.append(jnp.concatenate(
            [lp['q_b'] * scale, lp['k_b'], lp['v_b']], axis=1))           # (1, 3C)
        w_out.append(lp['o_w'])
        w_fc1.append(lp['fc1_w'])
        b_fc1.append(lp['fc1_b'])
        w_fc2.append(lp['fc2_w'])
        vecs.append(jnp.concatenate(
            [lp['o_b'], lp['ln1_g'], lp['ln1_b'], lp['ln2_g'], lp['ln2_b'],
             lp['fc2_b'], jnp.zeros((2, C), jnp.float32)], axis=0))       # (8, C)
    return {
        'w_attn': jnp.stack(w_attn).astype(jnp.bfloat16),
        'b_attn': jnp.stack(b_attn).astype(jnp.float32),
        'w_out': jnp.stack(w_out).astype(jnp.bfloat16),
        'w_fc1': jnp.stack(w_fc1).astype(jnp.bfloat16),
        'b_fc1': jnp.stack(b_fc1).astype(jnp.float32),
        'w_fc2': jnp.stack(w_fc2).astype(jnp.bfloat16),
        'vecs': jnp.stack(vecs).astype(jnp.float32),
    }


# --------------------------------------------------------------------------- #
# Plain-JAX glue: embedding lookups (AtomFeature) and attention-bias assembly
# (MoleculeAttnBias) — gathers / scatter-adds, not the matmul hot path.
# --------------------------------------------------------------------------- #
def atom_feature(p, batched_data):
    x = batched_data['x']                                            # (B, n, nf) int32
    node = jnp.take(p['atom_enc'], x, axis=0).sum(axis=-2)           # (B, n, C)
    deg = (jnp.take(p['in_deg_enc'], batched_data['in_degree'], axis=0)
           + jnp.take(p['out_deg_enc'], batched_data['out_degree'], axis=0))
    node = node + deg
    B = x.shape[0]
    C = p['graph_token'].shape[-1]
    gtok = jnp.broadcast_to(p['graph_token'][None], (B, 1, C))
    return jnp.concatenate([gtok, node], axis=1)                     # (B, T, C)


def molecule_attn_bias(p, batched_data, num_heads):
    attn_bias = batched_data['attn_bias']                            # (B, T, T)
    spatial_pos = batched_data['spatial_pos']                        # (B, n, n)
    attn_edge_type = batched_data['attn_edge_type']                  # (B, n, n, ne)
    B, T, _ = attn_bias.shape
    g = jnp.broadcast_to(attn_bias[:, None, :, :], (B, num_heads, T, T))
    sp = jnp.take(p['spatial_enc'], spatial_pos, axis=0)             # (B, n, n, H)
    g = g.at[:, :, 1:, 1:].add(jnp.transpose(sp, (0, 3, 1, 2)))
    t = p['graph_token_vdist'].reshape(1, num_heads, 1)
    g = g.at[:, :, 1:, 0].add(t)
    g = g.at[:, :, 0, :].add(t)
    e = jnp.take(p['edge_enc'], attn_edge_type, axis=0).mean(axis=-2)  # (B, n, n, H)
    g = g.at[:, :, 1:, 1:].add(jnp.transpose(e, (0, 3, 1, 2)))
    g = g + attn_bias[:, None, :, :]                                 # "reset" add (as in reference)
    return g                                                         # (B, H, T, T)


def transformer_m_encoder_forward(params, batched_data, *, num_heads,
                                  last_state_only=False):
    data_x = batched_data['x']
    n_mol = data_x.shape[0]
    padding_mask = (data_x[:, :, 0] == 0)
    padding_mask_cls = jnp.zeros((n_mol, 1), dtype=padding_mask.dtype)
    padding_mask = jnp.concatenate([padding_mask_cls, padding_mask], axis=1)  # (B, T)

    # TODO(synk): training-time 2D/3D mode-mask sampling (np.random.choice) skipped (eval).
    x = atom_feature(params, batched_data)                           # (B, T, C)
    attn_bias = molecule_attn_bias(params, batched_data, num_heads)  # (B, H, T, T)
    # Fold the key-padding mask into the additive bias (large negative, per review).
    attn_bias = attn_bias - 1e9 * padding_mask.astype(jnp.float32)[:, None, None, :]
    # TODO(synk): Molecule3DBias / AtomTaskHead path not built (add_3d=False -> None).
    # eval mode: embed_scale / quant_noise / emb_layer_norm / dropout are no-ops here.

    stacked = _prepare_stacked_params(params['layers'], num_heads)
    layer_out = _pallas_encoder_stack(x, attn_bias, stacked, num_heads)  # (L, B, T, C)

    atom_output = None
    if last_state_only:
        return [jnp.transpose(layer_out[-1], (1, 0, 2))], atom_output
    inner_states = [jnp.transpose(x, (1, 0, 2))]                     # (T, B, C)
    for l in range(layer_out.shape[0]):
        inner_states.append(jnp.transpose(layer_out[l], (1, 0, 2)))
    return inner_states, atom_output


# --------------------------------------------------------------------------- #
# Pure-JAX reference forward (f32, unfused) — used for an in-script check.
# --------------------------------------------------------------------------- #
def _ln_ref(v, g, b):
    mu = jnp.mean(v, axis=-1, keepdims=True)
    var = jnp.mean(jnp.square(v - mu), axis=-1, keepdims=True)
    return (v - mu) * jax.lax.rsqrt(var + 1e-5) * g + b


def reference_forward(params, batched_data, *, num_heads):
    data_x = batched_data['x']
    B = data_x.shape[0]
    pad = jnp.concatenate([jnp.zeros((B, 1), dtype=bool),
                           data_x[:, :, 0] == 0], axis=1)
    x = atom_feature(params, batched_data)
    bias = molecule_attn_bias(params, batched_data, num_heads)
    bias = bias - 1e9 * pad.astype(jnp.float32)[:, None, None, :]
    _, T, C = x.shape
    H = num_heads
    D = C // H
    states = [jnp.transpose(x, (1, 0, 2))]
    for lp in params['layers']:
        h = _ln_ref(x, lp['ln1_g'], lp['ln1_b'])
        q = (jnp.einsum('btc,cd->btd', h, lp['q_w']) + lp['q_b']) * (D ** -0.5)
        k = jnp.einsum('btc,cd->btd', h, lp['k_w']) + lp['k_b']
        v = jnp.einsum('btc,cd->btd', h, lp['v_w']) + lp['v_b']
        qh, kh, vh = (a.reshape(B, T, H, D) for a in (q, k, v))
        s = jnp.einsum('bqhd,bkhd->bhqk', qh, kh) + bias
        p = jax.nn.softmax(s, axis=-1)
        ctx = jnp.einsum('bhqk,bkhd->bqhd', p, vh).reshape(B, T, C)
        x = x + jnp.einsum('btc,cd->btd', ctx, lp['o_w']) + lp['o_b']
        h2 = _ln_ref(x, lp['ln2_g'], lp['ln2_b'])
        h2 = jnp.maximum(jnp.einsum('btc,cf->btf', h2, lp['fc1_w']) + lp['fc1_b'], 0.0)
        x = x + jnp.einsum('btf,fc->btc', h2, lp['fc2_w']) + lp['fc2_b']
        states.append(jnp.transpose(x, (1, 0, 2)))
    return states


# --------------------------------------------------------------------------- #
# Deterministic synthetic parameter init (matches module __init__ shapes).
# --------------------------------------------------------------------------- #
def init_model_params(key, *, num_atoms, num_in_degree, num_out_degree,
                      num_edges, num_spatial, embedding_dim, ffn_embedding_dim,
                      num_attention_heads, num_encoder_layers):
    C, F, H = embedding_dim, ffn_embedding_dim, num_attention_heads
    keys = jax.random.split(key, 7 + num_encoder_layers)

    def emb(k, n, d, pad0=True):
        w = 0.02 * jax.random.normal(k, (n, d), jnp.float32)
        if pad0:
            w = w.at[0].set(0.0)   # padding_idx=0
        return w

    p = {
        'atom_enc': emb(keys[0], num_atoms + 1, C),
        'in_deg_enc': emb(keys[1], num_in_degree, C),
        'out_deg_enc': emb(keys[2], num_out_degree, C),
        'graph_token': 0.02 * jax.random.normal(keys[3], (1, C), jnp.float32),
        'edge_enc': emb(keys[4], num_edges + 1, H),
        'spatial_enc': emb(keys[5], num_spatial, H),
        'graph_token_vdist': 0.02 * jax.random.normal(keys[6], (1, H), jnp.float32),
        'layers': [],
    }
    for i in range(num_encoder_layers):
        lk = jax.random.split(keys[7 + i], 6)
        lp = {
            'q_w': 0.02 * jax.random.normal(lk[0], (C, C), jnp.float32),
            'q_b': jnp.zeros((1, C), jnp.float32),
            'k_w': 0.02 * jax.random.normal(lk[1], (C, C), jnp.float32),
            'k_b': jnp.zeros((1, C), jnp.float32),
            'v_w': 0.02 * jax.random.normal(lk[2], (C, C), jnp.float32),
            'v_b': jnp.zeros((1, C), jnp.float32),
            'o_w': 0.02 * jax.random.normal(lk[3], (C, C), jnp.float32),
            'o_b': jnp.zeros((1, C), jnp.float32),
            'ln1_g': jnp.ones((1, C), jnp.float32),
            'ln1_b': jnp.zeros((1, C), jnp.float32),
            'fc1_w': 0.02 * jax.random.normal(lk[4], (C, F), jnp.float32),
            'fc1_b': jnp.zeros((1, F), jnp.float32),
            'fc2_w': 0.02 * jax.random.normal(lk[5], (F, C), jnp.float32),
            'fc2_b': jnp.zeros((1, C), jnp.float32),
            'ln2_g': jnp.ones((1, C), jnp.float32),
            'ln2_b': jnp.zeros((1, C), jnp.float32),
        }
        p['layers'].append(lp)
    return p


if __name__ == "__main__":
    key = jax.random.PRNGKey(0)

    # small config
    B, n_atom = 2, 7
    C, F, H, L = 32, 64, 4, 2
    num_atoms, num_in_degree, num_out_degree = 64, 16, 16
    num_edges, num_spatial = 16, 16
    n_node_feat, n_edge_feat = 3, 2
    T = n_atom + 1                    # + graph (CLS) token

    pkey, dkey = jax.random.split(key)
    params = init_model_params(
        pkey, num_atoms=num_atoms, num_in_degree=num_in_degree,
        num_out_degree=num_out_degree, num_edges=num_edges,
        num_spatial=num_spatial, embedding_dim=C, ffn_embedding_dim=F,
        num_attention_heads=H, num_encoder_layers=L)

    dks = jax.random.split(dkey, 5)
    data_x = jax.random.randint(dks[0], (B, n_atom, n_node_feat), 1,
                                num_atoms + 1, dtype=jnp.int32)
    data_x = data_x.at[1, 5:, :].set(0)      # two padded atoms in graph 1
    in_degree = jax.random.randint(dks[1], (B, n_atom), 1, num_in_degree,
                                   dtype=jnp.int32)
    out_degree = jax.random.randint(dks[2], (B, n_atom), 1, num_out_degree,
                                    dtype=jnp.int32)
    attn_bias_in = jnp.zeros((B, T, T), jnp.float32)
    spatial_pos = jax.random.randint(dks[3], (B, n_atom, n_atom), 1,
                                     num_spatial, dtype=jnp.int32)
    attn_edge_type = jax.random.randint(dks[4], (B, n_atom, n_atom, n_edge_feat),
                                        0, num_edges + 1, dtype=jnp.int32)

    batched_data = {
        'x': data_x,
        'in_degree': in_degree,
        'out_degree': out_degree,
        'attn_bias': attn_bias_in,
        'spatial_pos': spatial_pos,
        'attn_edge_type': attn_edge_type,
    }

    inner_states, atom_output = transformer_m_encoder_forward(
        params, batched_data, num_heads=H)
    for s in inner_states:
        jax.block_until_ready(s)

    # In-script correctness check against a pure-JAX f32 reference (bf16 MXU
    # inputs + approx reciprocal in the kernel -> loose-but-safe tolerance).
    ref_states = reference_forward(params, batched_data, num_heads=H)

    assert atom_output is None
    assert len(inner_states) == L + 1
    assert all(s.shape == (T, B, C) for s in inner_states)
    assert all(bool(jnp.all(jnp.isfinite(s))) for s in inner_states)
    for s, r in zip(inner_states, ref_states):
        assert float(jnp.max(jnp.abs(s - r))) < 2e-2

    print("KERNEL_OK")
</pallas_src>

<mosaic_0001>
module attributes {stable_mosaic.version = 11 : i64} {
  func.func @_encoder_stack_kernel(%arg0: i32, %arg1: memref<16x32xf32, #tpu.memory_space<vmem>>, %arg2: memref<2x4x8x8xf32, #tpu.memory_space<vmem>>, %arg3: memref<1x32x96xbf16, #tpu.memory_space<vmem>>, %arg4: memref<1x1x96xf32, #tpu.memory_space<vmem>>, %arg5: memref<1x32x32xbf16, #tpu.memory_space<vmem>>, %arg6: memref<1x8x32xf32, #tpu.memory_space<vmem>>, %arg7: memref<1x32x64xbf16, #tpu.memory_space<vmem>>, %arg8: memref<1x1x64xf32, #tpu.memory_space<vmem>>, %arg9: memref<1x64x32xbf16, #tpu.memory_space<vmem>>, %arg10: memref<1x16x32xf32, #tpu.memory_space<vmem>>, %arg11: memref<16x32xf32, #tpu.memory_space<vmem>>) attributes {dimension_semantics = [#tpu.dimension_semantics<arbitrary>], iteration_bounds = array<i64: 2>, scalar_prefetch = 0 : i64, scratch_operands = 1 : i64, tpu.core_type = #tpu.core_type<tc>, window_params = [{pipeline_mode = #tpu.pipeline_mode<synchronous>, transform_indices = @transform_0, window_bounds = array<i64: 16, 32>}, {pipeline_mode = #tpu.pipeline_mode<synchronous>, transform_indices = @transform_1, window_bounds = array<i64: 2, 4, 8, 8>}, {transform_indices = @transform_2, window_bounds = array<i64: 1, 32, 96>}, {transform_indices = @transform_3, window_bounds = array<i64: 1, 1, 96>}, {transform_indices = @transform_4, window_bounds = array<i64: 1, 32, 32>}, {transform_indices = @transform_5, window_bounds = array<i64: 1, 8, 32>}, {transform_indices = @transform_6, window_bounds = array<i64: 1, 32, 64>}, {transform_indices = @transform_7, window_bounds = array<i64: 1, 1, 64>}, {transform_indices = @transform_8, window_bounds = array<i64: 1, 64, 32>}, {transform_indices = @transform_9, window_bounds = array<i64: 1, 16, 32>}]} {
    %c0_i32 = arith.constant 0 : i32
    %0 = arith.cmpi eq, %arg0, %c0_i32 : i32
    %1 = arith.extui %0 : i1 to i32
    %c0_i32_0 = arith.constant 0 : i32
    %2 = arith.cmpi ne, %1, %c0_i32_0 : i32
    scf.if %2 {
      %c0_103 = arith.constant 0 : index
      %c0_104 = arith.constant 0 : index
      %254 = vector.load %arg1[%c0_103, %c0_104] : memref<16x32xf32, #tpu.memory_space<vmem>>, vector<16x32xf32>
      %c0_105 = arith.constant 0 : index
      %c0_106 = arith.constant 0 : index
      %255 = vector.load %arg11[%c0_105, %c0_106] : memref<16x32xf32, #tpu.memory_space<vmem>>, vector<16x32xf32>
      tpu.vector_store %arg11[%c0_105, %c0_106], %254 {strides = array<i32>} : memref<16x32xf32, #tpu.memory_space<vmem>>, vector<16x32xf32>,
    } else {
    }
    %c0 = arith.constant 0 : index
    %c0_1 = arith.constant 0 : index
    %3 = vector.load %arg11[%c0, %c0_1] : memref<16x32xf32, #tpu.memory_space<vmem>>, vector<16x32xf32>
    %c0_2 = arith.constant 0 : index
    %c0_3 = arith.constant 0 : index
    %c0_4 = arith.constant 0 : index
    %4 = vector.load %arg6[%c0_2, %c0_3, %c0_4] : memref<1x8x32xf32, #tpu.memory_space<vmem>>, vector<1x8x32xf32>
    %5 = vector.shape_cast %4 : vector<1x8x32xf32> to vector<8x32xf32>
    %6 = vector.extract_strided_slice %5 {offsets = [0, 0], sizes = [1, 32], strides = [1, 1]} : vector<8x32xf32> to vector<1x32xf32>
    %7 = vector.extract_strided_slice %5 {offsets = [1, 0], sizes = [1, 32], strides = [1, 1]} : vector<8x32xf32> to vector<1x32xf32>
    %8 = vector.extract_strided_slice %5 {offsets = [2, 0], sizes = [1, 32], strides = [1, 1]} : vector<8x32xf32> to vector<1x32xf32>
    %9 = vector.extract_strided_slice %5 {offsets = [3, 0], sizes = [1, 32], strides = [1, 1]} : vector<8x32xf32> to vector<1x32xf32>
    %10 = vector.extract_strided_slice %5 {offsets = [4, 0], sizes = [1, 32], strides = [1, 1]} : vector<8x32xf32> to vector<1x32xf32>
    %11 = vector.extract_strided_slice %5 {offsets = [5, 0], sizes = [1, 32], strides = [1, 1]} : vector<8x32xf32> to vector<1x32xf32>
    %cst = arith.constant dense<0.000000e+00> : vector<16xf32>
    %12 = vector.multi_reduction <add>, %3, %cst [1] : vector<16x32xf32> to vector<16xf32>
    %13 = vector.shape_cast %12 : vector<16xf32> to vector<16x1xf32>
    %cst_5 = arith.constant 3.200000e+01 : f32
    %14 = vector.broadcast %cst_5 : f32 to vector<16x1xf32>
    %15 = arith.divf %13, %14 : vector<16x1xf32>
    %16 = vector.broadcast %15 : vector<16x1xf32> to vector<16x32xf32>
    %17 = arith.subf %3, %16 : vector<16x32xf32>
    %18 = arith.mulf %17, %17 : vector<16x32xf32>
    %cst_6 = arith.constant dense<0.000000e+00> : vector<16xf32>
    %19 = vector.multi_reduction <add>, %18, %cst_6 [1] : vector<16x32xf32> to vector<16xf32>
    %20 = vector.shape_cast %19 : vector<16xf32> to vector<16x1xf32>
    %cst_7 = arith.constant 3.200000e+01 : f32
    %21 = vector.broadcast %cst_7 : f32 to vector<16x1xf32>
    %22 = arith.divf %20, %21 : vector<16x1xf32>
    %23 = vector.broadcast %15 : vector<16x1xf32> to vector<16x32xf32>
    %24 = arith.subf %3, %23 : vector<16x32xf32>
    %cst_8 = arith.constant 9.99999974E-6 : f32
    %25 = vector.broadcast %cst_8 : f32 to vector<16x1xf32>
    %26 = arith.addf %22, %25 : vector<16x1xf32>
    %27 = math.rsqrt %26 : vector<16x1xf32>
    %28 = vector.broadcast %27 : vector<16x1xf32> to vector<16x32xf32>
    %29 = arith.mulf %24, %28 : vector<16x32xf32>
    %30 = vector.broadcast %7 : vector<1x32xf32> to vector<16x32xf32>
    %31 = arith.mulf %29, %30 : vector<16x32xf32>
    %32 = vector.broadcast %8 : vector<1x32xf32> to vector<16x32xf32>
    %33 = arith.addf %31, %32 : vector<16x32xf32>
    %34 = arith.truncf %33 : vector<16x32xf32> to vector<16x32xbf16>
    %c0_9 = arith.constant 0 : index
    %c0_10 = arith.constant 0 : index
    %c0_11 = arith.constant 0 : index
    %35 = vector.load %arg3[%c0_9, %c0_10, %c0_11] : memref<1x32x96xbf16, #tpu.memory_space<vmem>>, vector<1x32x96xbf16>
    %36 = vector.shape_cast %35 : vector<1x32x96xbf16> to vector<32x96xbf16>
    %cst_12 = arith.constant dense<0.000000e+00> : vector<16x96xf32>
    %37 = tpu.matmul %34, %36, %cst_12 {dimension_numbers = #tpu.dot_dimension_numbers<[1], [0], [0], [1], [0, 0, 1, 1], [], []>} : vector<16x32xbf16>, vector<32x96xbf16>, vector<16x96xf32> -> vector<16x96xf32>
    %c0_13 = arith.constant 0 : index
    %c0_14 = arith.constant 0 : index
    %c0_15 = arith.constant 0 : index
    %38 = vector.load %arg4[%c0_13, %c0_14, %c0_15] : memref<1x1x96xf32, #tpu.memory_space<vmem>>, vector<1x1x96xf32>
    %39 = vector.shape_cast %38 : vector<1x1x96xf32> to vector<1x96xf32>
    %40 = vector.broadcast %39 : vector<1x96xf32> to vector<16x96xf32>
    %41 = arith.addf %37, %40 : vector<16x96xf32>
    %42 = vector.extract_strided_slice %41 {offsets = [0, 0], sizes = [16, 32], strides = [1, 1]} : vector<16x96xf32> to vector<16x32xf32>
    %43 = arith.truncf %42 : vector<16x32xf32> to vector<16x32xbf16>
    %44 = vector.extract_strided_slice %41 {offsets = [0, 32], sizes = [16, 32], strides = [1, 1]} : vector<16x96xf32> to vector<16x32xf32>
    %45 = tpu.transpose %44, [1, 0] : vector<16x32xf32> -> vector<32x16xf32>
    %46 = arith.truncf %45 : vector<32x16xf32> to vector<32x16xbf16>
    %47 = vector.extract_strided_slice %41 {offsets = [0, 64], sizes = [16, 32], strides = [1, 1]} : vector<16x96xf32> to vector<16x32xf32>
    %48 = arith.truncf %47 : vector<16x32xf32> to vector<16x32xbf16>
    %49 = vector.extract_strided_slice %43 {offsets = [0, 0], sizes = [8, 8], strides = [1, 1]} : vector<16x32xbf16> to vector<8x8xbf16>
    %50 = vector.extract_strided_slice %46 {offsets = [0, 0], sizes = [8, 8], strides = [1, 1]} : vector<32x16xbf16> to vector<8x8xbf16>
    %cst_16 = arith.constant dense<0.000000e+00> : vector<8x8xf32>
    %51 = tpu.matmul %49, %50, %cst_16 {dimension_numbers = #tpu.dot_dimension_numbers<[1], [0], [0], [1], [0, 0, 1, 1], [], []>} : vector<8x8xbf16>, vector<8x8xbf16>, vector<8x8xf32> -> vector<8x8xf32>
    %c0_17 = arith.constant 0 : index
    %c0_18 = arith.constant 0 : index
    %c0_19 = arith.constant 0 : index
    %c0_20 = arith.constant 0 : index
    %52 = vector.load %arg2[%c0_17, %c0_18, %c0_19, %c0_20] : memref<2x4x8x8xf32, #tpu.memory_space<vmem>>, vector<1x1x8x8xf32>
    %53 = vector.shape_cast %52 : vector<1x1x8x8xf32> to vector<8x8xf32>
    %54 = arith.addf %51, %53 : vector<8x8xf32>
    %cst_21 = arith.constant dense<0xFF800000> : vector<8xf32>
    %55 = vector.multi_reduction <maximumf>, %54, %cst_21 [1] : vector<8x8xf32> to vector<8xf32>
    %56 = vector.shape_cast %55 : vector<8xf32> to vector<8x1xf32>
    %57 = vector.broadcast %56 : vector<8x1xf32> to vector<8x8xf32>
    %58 = arith.subf %54, %57 : vector<8x8xf32>
    %59 = math.exp %58 : vector<8x8xf32>
    %cst_22 = arith.constant dense<0.000000e+00> : vector<8xf32>
    %60 = vector.multi_reduction <add>, %59, %cst_22 [1] : vector<8x8xf32> to vector<8xf32>
    %61 = vector.shape_cast %60 : vector<8xf32> to vector<8x1xf32>
    %62 = tpu.reciprocal %61 {approx = true} : vector<8x1xf32> -> vector<8x1xf32>
    %63 = vector.broadcast %62 : vector<8x1xf32> to vector<8x8xf32>
    %64 = arith.mulf %59, %63 : vector<8x8xf32>
    %65 = arith.truncf %64 : vector<8x8xf32> to vector<8x8xbf16>
    %66 = vector.extract_strided_slice %48 {offsets = [0, 0], sizes = [8, 8], strides = [1, 1]} : vector<16x32xbf16> to vector<8x8xbf16>
    %cst_23 = arith.constant dense<0.000000e+00> : vector<8x8xf32>
    %67 = tpu.matmul %65, %66, %cst_23 {dimension_numbers = #tpu.dot_dimension_numbers<[1], [0], [0], [1], [0, 0, 1, 1], [], []>} : vector<8x8xbf16>, vector<8x8xbf16>, vector<8x8xf32> -> vector<8x8xf32>
    %68 = vector.extract_strided_slice %43 {offsets = [0, 8], sizes = [8, 8], strides = [1, 1]} : vector<16x32xbf16> to vector<8x8xbf16>
    %69 = vector.extract_strided_slice %46 {offsets = [8, 0], sizes = [8, 8], strides = [1, 1]} : vector<32x16xbf16> to vector<8x8xbf16>
    %cst_24 = arith.constant dense<0.000000e+00> : vector<8x8xf32>
    %70 = tpu.matmul %68, %69, %cst_24 {dimension_numbers = #tpu.dot_dimension_numbers<[1], [0], [0], [1], [0, 0, 1, 1], [], []>} : vector<8x8xbf16>, vector<8x8xbf16>, vector<8x8xf32> -> vector<8x8xf32>
    %c0_25 = arith.constant 0 : index
    %c1 = arith.constant 1 : index
    %c0_26 = arith.constant 0 : index
    %c0_27 = arith.constant 0 : index
    %71 = vector.load %arg2[%c0_25, %c1, %c0_26, %c0_27] : memref<2x4x8x8xf32, #tpu.memory_space<vmem>>, vector<1x1x8x8xf32>
    %72 = vector.shape_cast %71 : vector<1x1x8x8xf32> to vector<8x8xf32>
    %73 = arith.addf %70, %72 : vector<8x8xf32>
    %cst_28 = arith.constant dense<0xFF800000> : vector<8xf32>
    %74 = vector.multi_reduction <maximumf>, %73, %cst_28 [1] : vector<8x8xf32> to vector<8xf32>
    %75 = vector.shape_cast %74 : vector<8xf32> to vector<8x1xf32>
    %76 = vector.broadcast %75 : vector<8x1xf32> to vector<8x8xf32>
    %77 = arith.subf %73, %76 : vector<8x8xf32>
    %78 = math.exp %77 : vector<8x8xf32>
    %cst_29 = arith.constant dense<0.000000e+00> : vector<8xf32>
    %79 = vector.multi_reduction <add>, %78, %cst_29 [1] : vector<8x8xf32> to vector<8xf32>
    %80 = vector.shape_cast %79 : vector<8xf32> to vector<8x1xf32>
    %81 = tpu.reciprocal %80 {approx = true} : vector<8x1xf32> -> vector<8x1xf32>
    %82 = vector.broadcast %81 : vector<8x1xf32> to vector<8x8xf32>
    %83 = arith.mulf %78, %82 : vector<8x8xf32>
    %84 = arith.truncf %83 : vector<8x8xf32> to vector<8x8xbf16>
    %85 = vector.extract_strided_slice %48 {offsets = [0, 8], sizes = [8, 8], strides = [1, 1]} : vector<16x32xbf16> to vector<8x8xbf16>
    %cst_30 = arith.constant dense<0.000000e+00> : vector<8x8xf32>
    %86 = tpu.matmul %84, %85, %cst_30 {dimension_numbers = #tpu.dot_dimension_numbers<[1], [0], [0], [1], [0, 0, 1, 1], [], []>} : vector<8x8xbf16>, vector<8x8xbf16>, vector<8x8xf32> -> vector<8x8xf32>
    %87 = vector.extract_strided_slice %43 {offsets = [0, 16], sizes = [8, 8], strides = [1, 1]} : vector<16x32xbf16> to vector<8x8xbf16>
    %88 = vector.extract_strided_slice %46 {offsets = [16, 0], sizes = [8, 8], strides = [1, 1]} : vector<32x16xbf16> to vector<8x8xbf16>
    %cst_31 = arith.constant dense<0.000000e+00> : vector<8x8xf32>
    %89 = tpu.matmul %87, %88, %cst_31 {dimension_numbers = #tpu.dot_dimension_numbers<[1], [0], [0], [1], [0, 0, 1, 1], [], []>} : vector<8x8xbf16>, vector<8x8xbf16>, vector<8x8xf32> -> vector<8x8xf32>
    %c0_32 = arith.constant 0 : index
    %c2 = arith.constant 2 : index
    %c0_33 = arith.constant 0 : index
    %c0_34 = arith.constant 0 : index
    %90 = vector.load %arg2[%c0_32, %c2, %c0_33, %c0_34] : memref<2x4x8x8xf32, #tpu.memory_space<vmem>>, vector<1x1x8x8xf32>
    %91 = vector.shape_cast %90 : vector<1x1x8x8xf32> to vector<8x8xf32>
    %92 = arith.addf %89, %91 : vector<8x8xf32>
    %cst_35 = arith.constant dense<0xFF800000> : vector<8xf32>
    %93 = vector.multi_reduction <maximumf>, %92, %cst_35 [1] : vector<8x8xf32> to vector<8xf32>
    %94 = vector.shape_cast %93 : vector<8xf32> to vector<8x1xf32>
    %95 = vector.broadcast %94 : vector<8x1xf32> to vector<8x8xf32>
    %96 = arith.subf %92, %95 : vector<8x8xf32>
    %97 = math.exp %96 : vector<8x8xf32>
    %cst_36 = arith.constant dense<0.000000e+00> : vector<8xf32>
    %98 = vector.multi_reduction <add>, %97, %cst_36 [1] : vector<8x8xf32> to vector<8xf32>
    %99 = vector.shape_cast %98 : vector<8xf32> to vector<8x1xf32>
    %100 = tpu.reciprocal %99 {approx = true} : vector<8x1xf32> -> vector<8x1xf32>
    %101 = vector.broadcast %100 : vector<8x1xf32> to vector<8x8xf32>
    %102 = arith.mulf %97, %101 : vector<8x8xf32>
    %103 = arith.truncf %102 : vector<8x8xf32> to vector<8x8xbf16>
    %104 = vector.extract_strided_slice %48 {offsets = [0, 16], sizes = [8, 8], strides = [1, 1]} : vector<16x32xbf16> to vector<8x8xbf16>
    %cst_37 = arith.constant dense<0.000000e+00> : vector<8x8xf32>
    %105 = tpu.matmul %103, %104, %cst_37 {dimension_numbers = #tpu.dot_dimension_numbers<[1], [0], [0], [1], [0, 0, 1, 1], [], []>} : vector<8x8xbf16>, vector<8x8xbf16>, vector<8x8xf32> -> vector<8x8xf32>
    %106 = vector.extract_strided_slice %43 {offsets = [0, 24], sizes = [8, 8], strides = [1, 1]} : vector<16x32xbf16> to vector<8x8xbf16>
    %107 = vector.extract_strided_slice %46 {offsets = [24, 0], sizes = [8, 8], strides = [1, 1]} : vector<32x16xbf16> to vector<8x8xbf16>
    %cst_38 = arith.constant dense<0.000000e+00> : vector<8x8xf32>
    %108 = tpu.matmul %106, %107, %cst_38 {dimension_numbers = #tpu.dot_dimension_numbers<[1], [0], [0], [1], [0, 0, 1, 1], [], []>} : vector<8x8xbf16>, vector<8x8xbf16>, vector<8x8xf32> -> vector<8x8xf32>
    %c0_39 = arith.constant 0 : index
    %c3 = arith.constant 3 : index
    %c0_40 = arith.constant 0 : index
    %c0_41 = arith.constant 0 : index
    %109 = vector.load %arg2[%c0_39, %c3, %c0_40, %c0_41] : memref<2x4x8x8xf32, #tpu.memory_space<vmem>>, vector<1x1x8x8xf32>
    %110 = vector.shape_cast %109 : vector<1x1x8x8xf32> to vector<8x8xf32>
    %111 = arith.addf %108, %110 : vector<8x8xf32>
    %cst_42 = arith.constant dense<0xFF800000> : vector<8xf32>
    %112 = vector.multi_reduction <maximumf>, %111, %cst_42 [1] : vector<8x8xf32> to vector<8xf32>
    %113 = vector.shape_cast %112 : vector<8xf32> to vector<8x1xf32>
    %114 = vector.broadcast %113 : vector<8x1xf32> to vector<8x8xf32>
    %115 = arith.subf %111, %114 : vector<8x8xf32>
    %116 = math.exp %115 : vector<8x8xf32>
    %cst_43 = arith.constant dense<0.000000e+00> : vector<8xf32>
    %117 = vector.multi_reduction <add>, %116, %cst_43 [1] : vector<8x8xf32> to vector<8xf32>
    %118 = vector.shape_cast %117 : vector<8xf32> to vector<8x1xf32>
    %119 = tpu.reciprocal %118 {approx = true} : vector<8x1xf32> -> vector<8x1xf32>
    %120 = vector.broadcast %119 : vector<8x1xf32> to vector<8x8xf32>
    %121 = arith.mulf %116, %120 : vector<8x8xf32>
    %122 = arith.truncf %121 : vector<8x8xf32> to vector<8x8xbf16>
    %123 = vector.extract_strided_slice %48 {offsets = [0, 24], sizes = [8, 8], strides = [1, 1]} : vector<16x32xbf16> to vector<8x8xbf16>
    %cst_44 = arith.constant dense<0.000000e+00> : vector<8x8xf32>
    %124 = tpu.matmul %122, %123, %cst_44 {dimension_numbers = #tpu.dot_dimension_numbers<[1], [0], [0], [1], [0, 0, 1, 1], [], []>} : vector<8x8xbf16>, vector<8x8xbf16>, vector<8x8xf32> -> vector<8x8xf32>
    %125 = tpu.concatenate %67, %86, %105, %124 in 1 : vector<8x8xf32>, vector<8x8xf32>, vector<8x8xf32>, vector<8x8xf32> -> vector<8x32xf32>
    %126 = vector.extract_strided_slice %43 {offsets = [8, 0], sizes = [8, 8], strides = [1, 1]} : vector<16x32xbf16> to vector<8x8xbf16>
    %127 = vector.extract_strided_slice %46 {offsets = [0, 8], sizes = [8, 8], strides = [1, 1]} : vector<32x16xbf16> to vector<8x8xbf16>
    %cst_45 = arith.constant dense<0.000000e+00> : vector<8x8xf32>
    %128 = tpu.matmul %126, %127, %cst_45 {dimension_numbers = #tpu.dot_dimension_numbers<[1], [0], [0], [1], [0, 0, 1, 1], [], []>} : vector<8x8xbf16>, vector<8x8xbf16>, vector<8x8xf32> -> vector<8x8xf32>
    %c1_46 = arith.constant 1 : index
    %c0_47 = arith.constant 0 : index
    %c0_48 = arith.constant 0 : index
    %c0_49 = arith.constant 0 : index
    %129 = vector.load %arg2[%c1_46, %c0_47, %c0_48, %c0_49] : memref<2x4x8x8xf32, #tpu.memory_space<vmem>>, vector<1x1x8x8xf32>
    %130 = vector.shape_cast %129 : vector<1x1x8x8xf32> to vector<8x8xf32>
    %131 = arith.addf %128, %130 : vector<8x8xf32>
    %cst_50 = arith.constant dense<0xFF800000> : vector<8xf32>
    %132 = vector.multi_reduction <maximumf>, %131, %cst_50 [1] : vector<8x8xf32> to vector<8xf32>
    %133 = vector.shape_cast %132 : vector<8xf32> to vector<8x1xf32>
    %134 = vector.broadcast %133 : vector<8x1xf32> to vector<8x8xf32>
    %135 = arith.subf %131, %134 : vector<8x8xf32>
    %136 = math.exp %135 : vector<8x8xf32>
    %cst_51 = arith.constant dense<0.000000e+00> : vector<8xf32>
    %137 = vector.multi_reduction <add>, %136, %cst_51 [1] : vector<8x8xf32> to vector<8xf32>
    %138 = vector.shape_cast %137 : vector<8xf32> to vector<8x1xf32>
    %139 = tpu.reciprocal %138 {approx = true} : vector<8x1xf32> -> vector<8x1xf32>
    %140 = vector.broadcast %139 : vector<8x1xf32> to vector<8x8xf32>
    %141 = arith.mulf %136, %140 : vector<8x8xf32>
    %142 = arith.truncf %141 : vector<8x8xf32> to vector<8x8xbf16>
    %143 = vector.extract_strided_slice %48 {offsets = [8, 0], sizes = [8, 8], strides = [1, 1]} : vector<16x32xbf16> to vector<8x8xbf16>
    %cst_52 = arith.constant dense<0.000000e+00> : vector<8x8xf32>
    %144 = tpu.matmul %142, %143, %cst_52 {dimension_numbers = #tpu.dot_dimension_numbers<[1], [0], [0], [1], [0, 0, 1, 1], [], []>} : vector<8x8xbf16>, vector<8x8xbf16>, vector<8x8xf32> -> vector<8x8xf32>
    %145 = vector.extract_strided_slice %43 {offsets = [8, 8], sizes = [8, 8], strides = [1, 1]} : vector<16x32xbf16> to vector<8x8xbf16>
    %146 = vector.extract_strided_slice %46 {offsets = [8, 8], sizes = [8, 8], strides = [1, 1]} : vector<32x16xbf16> to vector<8x8xbf16>
    %cst_53 = arith.constant dense<0.000000e+00> : vector<8x8xf32>
    %147 = tpu.matmul %145, %146, %cst_53 {dimension_numbers = #tpu.dot_dimension_numbers<[1], [0], [0], [1], [0, 0, 1, 1], [], []>} : vector<8x8xbf16>, vector<8x8xbf16>, vector<8x8xf32> -> vector<8x8xf32>
    %c1_54 = arith.constant 1 : index
    %c1_55 = arith.constant 1 : index
    %c0_56 = arith.constant 0 : index
    %c0_57 = arith.constant 0 : index
    %148 = vector.load %arg2[%c1_54, %c1_55, %c0_56, %c0_57] : memref<2x4x8x8xf32, #tpu.memory_space<vmem>>, vector<1x1x8x8xf32>
    %149 = vector.shape_cast %148 : vector<1x1x8x8xf32> to vector<8x8xf32>
    %150 = arith.addf %147, %149 : vector<8x8xf32>
    %cst_58 = arith.constant dense<0xFF800000> : vector<8xf32>
    %151 = vector.multi_reduction <maximumf>, %150, %cst_58 [1] : vector<8x8xf32> to vector<8xf32>
    %152 = vector.shape_cast %151 : vector<8xf32> to vector<8x1xf32>
    %153 = vector.broadcast %152 : vector<8x1xf32> to vector<8x8xf32>
    %154 = arith.subf %150, %153 : vector<8x8xf32>
    %155 = math.exp %154 : vector<8x8xf32>
    %cst_59 = arith.constant dense<0.000000e+00> : vector<8xf32>
    %156 = vector.multi_reduction <add>, %155, %cst_59 [1] : vector<8x8xf32> to vector<8xf32>
    %157 = vector.shape_cast %156 : vector<8xf32> to vector<8x1xf32>
    %158 = tpu.reciprocal %157 {approx = true} : vector<8x1xf32> -> vector<8x1xf32>
    %159 = vector.broadcast %158 : vector<8x1xf32> to vector<8x8xf32>
    %160 = arith.mulf %155, %159 : vector<8x8xf32>
    %161 = arith.truncf %160 : vector<8x8xf32> to vector<8x8xbf16>
    %162 = vector.extract_strided_slice %48 {offsets = [8, 8], sizes = [8, 8], strides = [1, 1]} : vector<16x32xbf16> to vector<8x8xbf16>
    %cst_60 = arith.constant dense<0.000000e+00> : vector<8x8xf32>
    %163 = tpu.matmul %161, %162, %cst_60 {dimension_numbers = #tpu.dot_dimension_numbers<[1], [0], [0], [1], [0, 0, 1, 1], [], []>} : vector<8x8xbf16>, vector<8x8xbf16>, vector<8x8xf32> -> vector<8x8xf32>
    %164 = vector.extract_strided_slice %43 {offsets = [8, 16], sizes = [8, 8], strides = [1, 1]} : vector<16x32xbf16> to vector<8x8xbf16>
    %165 = vector.extract_strided_slice %46 {offsets = [16, 8], sizes = [8, 8], strides = [1, 1]} : vector<32x16xbf16> to vector<8x8xbf16>
    %cst_61 = arith.constant dense<0.000000e+00> : vector<8x8xf32>
    %166 = tpu.matmul %164, %165, %cst_61 {dimension_numbers = #tpu.dot_dimension_numbers<[1], [0], [0], [1], [0, 0, 1, 1], [], []>} : vector<8x8xbf16>, vector<8x8xbf16>, vector<8x8xf32> -> vector<8x8xf32>
    %c1_62 = arith.constant 1 : index
    %c2_63 = arith.constant 2 : index
    %c0_64 = arith.constant 0 : index
    %c0_65 = arith.constant 0 : index
    %167 = vector.load %arg2[%c1_62, %c2_63, %c0_64, %c0_65] : memref<2x4x8x8xf32, #tpu.memory_space<vmem>>, vector<1x1x8x8xf32>
    %168 = vector.shape_cast %167 : vector<1x1x8x8xf32> to vector<8x8xf32>
    %169 = arith.addf %166, %168 : vector<8x8xf32>
    %cst_66 = arith.constant dense<0xFF800000> : vector<8xf32>
    %170 = vector.multi_reduction <maximumf>, %169, %cst_66 [1] : vector<8x8xf32> to vector<8xf32>
    %171 = vector.shape_cast %170 : vector<8xf32> to vector<8x1xf32>
    %172 = vector.broadcast %171 : vector<8x1xf32> to vector<8x8xf32>
    %173 = arith.subf %169, %172 : vector<8x8xf32>
    %174 = math.exp %173 : vector<8x8xf32>
    %cst_67 = arith.constant dense<0.000000e+00> : vector<8xf32>
    %175 = vector.multi_reduction <add>, %174, %cst_67 [1] : vector<8x8xf32> to vector<8xf32>
    %176 = vector.shape_cast %175 : vector<8xf32> to vector<8x1xf32>
    %177 = tpu.reciprocal %176 {approx = true} : vector<8x1xf32> -> vector<8x1xf32>
    %178 = vector.broadcast %177 : vector<8x1xf32> to vector<8x8xf32>
    %179 = arith.mulf %174, %178 : vector<8x8xf32>
    %180 = arith.truncf %179 : vector<8x8xf32> to vector<8x8xbf16>
    %181 = vector.extract_strided_slice %48 {offsets = [8, 16], sizes = [8, 8], strides = [1, 1]} : vector<16x32xbf16> to vector<8x8xbf16>
    %cst_68 = arith.constant dense<0.000000e+00> : vector<8x8xf32>
    %182 = tpu.matmul %180, %181, %cst_68 {dimension_numbers = #tpu.dot_dimension_numbers<[1], [0], [0], [1], [0, 0, 1, 1], [], []>} : vector<8x8xbf16>, vector<8x8xbf16>, vector<8x8xf32> -> vector<8x8xf32>
    %183 = vector.extract_strided_slice %43 {offsets = [8, 24], sizes = [8, 8], strides = [1, 1]} : vector<16x32xbf16> to vector<8x8xbf16>
    %184 = vector.extract_strided_slice %46 {offsets = [24, 8], sizes = [8, 8], strides = [1, 1]} : vector<32x16xbf16> to vector<8x8xbf16>
    %cst_69 = arith.constant dense<0.000000e+00> : vector<8x8xf32>
    %185 = tpu.matmul %183, %184, %cst_69 {dimension_numbers = #tpu.dot_dimension_numbers<[1], [0], [0], [1], [0, 0, 1, 1], [], []>} : vector<8x8xbf16>, vector<8x8xbf16>, vector<8x8xf32> -> vector<8x8xf32>
    %c1_70 = arith.constant 1 : index
    %c3_71 = arith.constant 3 : index
    %c0_72 = arith.constant 0 : index
    %c0_73 = arith.constant 0 : index
    %186 = vector.load %arg2[%c1_70, %c3_71, %c0_72, %c0_73] : memref<2x4x8x8xf32, #tpu.memory_space<vmem>>, vector<1x1x8x8xf32>
    %187 = vector.shape_cast %186 : vector<1x1x8x8xf32> to vector<8x8xf32>
    %188 = arith.addf %185, %187 : vector<8x8xf32>
    %cst_74 = arith.constant dense<0xFF800000> : vector<8xf32>
    %189 = vector.multi_reduction <maximumf>, %188, %cst_74 [1] : vector<8x8xf32> to vector<8xf32>
    %190 = vector.shape_cast %189 : vector<8xf32> to vector<8x1xf32>
    %191 = vector.broadcast %190 : vector<8x1xf32> to vector<8x8xf32>
    %192 = arith.subf %188, %191 : vector<8x8xf32>
    %193 = math.exp %192 : vector<8x8xf32>
    %cst_75 = arith.constant dense<0.000000e+00> : vector<8xf32>
    %194 = vector.multi_reduction <add>, %193, %cst_75 [1] : vector<8x8xf32> to vector<8xf32>
    %195 = vector.shape_cast %194 : vector<8xf32> to vector<8x1xf32>
    %196 = tpu.reciprocal %195 {approx = true} : vector<8x1xf32> -> vector<8x1xf32>
    %197 = vector.broadcast %196 : vector<8x1xf32> to vector<8x8xf32>
    %198 = arith.mulf %193, %197 : vector<8x8xf32>
    %199 = arith.truncf %198 : vector<8x8xf32> to vector<8x8xbf16>
    %200 = vector.extract_strided_slice %48 {offsets = [8, 24], sizes = [8, 8], strides = [1, 1]} : vector<16x32xbf16> to vector<8x8xbf16>
    %cst_76 = arith.constant dense<0.000000e+00> : vector<8x8xf32>
    %201 = tpu.matmul %199, %200, %cst_76 {dimension_numbers = #tpu.dot_dimension_numbers<[1], [0], [0], [1], [0, 0, 1, 1], [], []>} : vector<8x8xbf16>, vector<8x8xbf16>, vector<8x8xf32> -> vector<8x8xf32>
    %202 = tpu.concatenate %144, %163, %182, %201 in 1 : vector<8x8xf32>, vector<8x8xf32>, vector<8x8xf32>, vector<8x8xf32> -> vector<8x32xf32>
    %203 = tpu.concatenate %125, %202 in 0 : vector<8x32xf32>, vector<8x32xf32> -> vector<16x32xf32>
    %204 = arith.truncf %203 : vector<16x32xf32> to vector<16x32xbf16>
    %c0_77 = arith.constant 0 : index
    %c0_78 = arith.constant 0 : index
    %c0_79 = arith.constant 0 : index
    %205 = vector.load %arg5[%c0_77, %c0_78, %c0_79] : memref<1x32x32xbf16, #tpu.memory_space<vmem>>, vector<1x32x32xbf16>
    %206 = vector.shape_cast %205 : vector<1x32x32xbf16> to vector<32x32xbf16>
    %cst_80 = arith.constant dense<0.000000e+00> : vector<16x32xf32>
    %207 = tpu.matmul %204, %206, %cst_80 {dimension_numbers = #tpu.dot_dimension_numbers<[1], [0], [0], [1], [0, 0, 1, 1], [], []>} : vector<16x32xbf16>, vector<32x32xbf16>, vector<16x32xf32> -> vector<16x32xf32>
    %208 = vector.broadcast %6 : vector<1x32xf32> to vector<16x32xf32>
    %209 = arith.addf %207, %208 : vector<16x32xf32>
    %210 = arith.addf %3, %209 : vector<16x32xf32>
    %cst_81 = arith.constant dense<0.000000e+00> : vector<16xf32>
    %211 = vector.multi_reduction <add>, %210, %cst_81 [1] : vector<16x32xf32> to vector<16xf32>
    %212 = vector.shape_cast %211 : vector<16xf32> to vector<16x1xf32>
    %cst_82 = arith.constant 3.200000e+01 : f32
    %213 = vector.broadcast %cst_82 : f32 to vector<16x1xf32>
    %214 = arith.divf %212, %213 : vector<16x1xf32>
    %215 = vector.broadcast %214 : vector<16x1xf32> to vector<16x32xf32>
    %216 = arith.subf %210, %215 : vector<16x32xf32>
    %217 = arith.mulf %216, %216 : vector<16x32xf32>
    %cst_83 = arith.constant dense<0.000000e+00> : vector<16xf32>
    %218 = vector.multi_reduction <add>, %217, %cst_83 [1] : vector<16x32xf32> to vector<16xf32>
    %219 = vector.shape_cast %218 : vector<16xf32> to vector<16x1xf32>
    %cst_84 = arith.constant 3.200000e+01 : f32
    %220 = vector.broadcast %cst_84 : f32 to vector<16x1xf32>
    %221 = arith.divf %219, %220 : vector<16x1xf32>
    %222 = vector.broadcast %214 : vector<16x1xf32> to vector<16x32xf32>
    %223 = arith.subf %210, %222 : vector<16x32xf32>
    %cst_85 = arith.constant 9.99999974E-6 : f32
    %224 = vector.broadcast %cst_85 : f32 to vector<16x1xf32>
    %225 = arith.addf %221, %224 : vector<16x1xf32>
    %226 = math.rsqrt %225 : vector<16x1xf32>
    %227 = vector.broadcast %226 : vector<16x1xf32> to vector<16x32xf32>
    %228 = arith.mulf %223, %227 : vector<16x32xf32>
    %229 = vector.broadcast %9 : vector<1x32xf32> to vector<16x32xf32>
    %230 = arith.mulf %228, %229 : vector<16x32xf32>
    %231 = vector.broadcast %10 : vector<1x32xf32> to vector<16x32xf32>
    %232 = arith.addf %230, %231 : vector<16x32xf32>
    %233 = arith.truncf %232 : vector<16x32xf32> to vector<16x32xbf16>
    %c0_86 = arith.constant 0 : index
    %c0_87 = arith.constant 0 : index
    %c0_88 = arith.constant 0 : index
    %234 = vector.load %arg7[%c0_86, %c0_87, %c0_88] : memref<1x32x64xbf16, #tpu.memory_space<vmem>>, vector<1x32x64xbf16>
    %235 = vector.shape_cast %234 : vector<1x32x64xbf16> to vector<32x64xbf16>
    %cst_89 = arith.constant dense<0.000000e+00> : vector<16x64xf32>
    %236 = tpu.matmul %233, %235, %cst_89 {dimension_numbers = #tpu.dot_dimension_numbers<[1], [0], [0], [1], [0, 0, 1, 1], [], []>} : vector<16x32xbf16>, vector<32x64xbf16>, vector<16x64xf32> -> vector<16x64xf32>
    %c0_90 = arith.constant 0 : index
    %c0_91 = arith.constant 0 : index
    %c0_92 = arith.constant 0 : index
    %237 = vector.load %arg8[%c0_90, %c0_91, %c0_92] : memref<1x1x64xf32, #tpu.memory_space<vmem>>, vector<1x1x64xf32>
    %238 = vector.shape_cast %237 : vector<1x1x64xf32> to vector<1x64xf32>
    %239 = vector.broadcast %238 : vector<1x64xf32> to vector<16x64xf32>
    %240 = arith.addf %236, %239 : vector<16x64xf32>
    %cst_93 = arith.constant 0.000000e+00 : f32
    %241 = vector.broadcast %cst_93 : f32 to vector<16x64xf32>
    %242 = arith.maximumf %240, %241 : vector<16x64xf32>
    %243 = arith.truncf %242 : vector<16x64xf32> to vector<16x64xbf16>
    %c0_94 = arith.constant 0 : index
    %c0_95 = arith.constant 0 : index
    %c0_96 = arith.constant 0 : index
    %244 = vector.load %arg9[%c0_94, %c0_95, %c0_96] : memref<1x64x32xbf16, #tpu.memory_space<vmem>>, vector<1x64x32xbf16>
    %245 = vector.shape_cast %244 : vector<1x64x32xbf16> to vector<64x32xbf16>
    %cst_97 = arith.constant dense<0.000000e+00> : vector<16x32xf32>
    %246 = tpu.matmul %243, %245, %cst_97 {dimension_numbers = #tpu.dot_dimension_numbers<[1], [0], [0], [1], [0, 0, 1, 1], [], []>} : vector<16x64xbf16>, vector<64x32xbf16>, vector<16x32xf32> -> vector<16x32xf32>
    %247 = vector.broadcast %11 : vector<1x32xf32> to vector<16x32xf32>
    %248 = arith.addf %246, %247 : vector<16x32xf32>
    %249 = arith.addf %210, %248 : vector<16x32xf32>
    %c0_98 = arith.constant 0 : index
    %c0_99 = arith.constant 0 : index
    %250 = vector.load %arg11[%c0_98, %c0_99] : memref<16x32xf32, #tpu.memory_space<vmem>>, vector<16x32xf32>
    tpu.vector_store %arg11[%c0_98, %c0_99], %249 {strides = array<i32>} : memref<16x32xf32, #tpu.memory_space<vmem>>, vector<16x32xf32>,
    %c0_100 = arith.constant 0 : index
    %c0_101 = arith.constant 0 : index
    %c0_102 = arith.constant 0 : index
    %251 = vector.load %arg10[%c0_100, %c0_101, %c0_102] : memref<1x16x32xf32, #tpu.memory_space<vmem>>, vector<1x16x32xf32>
    %252 = vector.shape_cast %251 : vector<1x16x32xf32> to vector<16x32xf32>
    %253 = vector.shape_cast %249 : vector<16x32xf32> to vector<1x16x32xf32>
    tpu.vector_store %arg10[%c0_100, %c0_101, %c0_102], %253 {strides = array<i32>} : memref<1x16x32xf32, #tpu.memory_space<vmem>>, vector<1x16x32xf32>,
    return
  }
  func.func @transform_0(%arg0: i32) -> (i32, i32) {
    %c0_i32 = arith.constant 0 : i32
    %c0_i32_0 = arith.constant 0 : i32
    %c0_i32_1 = arith.constant 0 : i32
    return %c0_i32, %c0_i32_0 : i32, i32
  }
  func.func @transform_1(%arg0: i32) -> (i32, i32, i32, i32) {
    %c0_i32 = arith.constant 0 : i32
    %c0_i32_0 = arith.constant 0 : i32
    %c0_i32_1 = arith.constant 0 : i32
    %c0_i32_2 = arith.constant 0 : i32
    %c0_i32_3 = arith.constant 0 : i32
    return %c0_i32, %c0_i32_0, %c0_i32_1, %c0_i32_2 : i32, i32, i32, i32
  }
  func.func @transform_2(%arg0: i32) -> (i32, i32, i32) {
    %c0_i32 = arith.constant 0 : i32
    %c0_i32_0 = arith.constant 0 : i32
    %c0_i32_1 = arith.constant 0 : i32
    return %arg0, %c0_i32, %c0_i32_0 : i32, i32, i32
  }
  func.func @transform_3(%arg0: i32) -> (i32, i32, i32) {
    %c0_i32 = arith.constant 0 : i32
    %c0_i32_0 = arith.constant 0 : i32
    %c0_i32_1 = arith.constant 0 : i32
    return %arg0, %c0_i32, %c0_i32_0 : i32, i32, i32
  }
  func.func @transform_4(%arg0: i32) -> (i32, i32, i32) {
    %c0_i32 = arith.constant 0 : i32
    %c0_i32_0 = arith.constant 0 : i32
    %c0_i32_1 = arith.constant 0 : i32
    return %arg0, %c0_i32, %c0_i32_0 : i32, i32, i32
  }
  func.func @transform_5(%arg0: i32) -> (i32, i32, i32) {
    %c0_i32 = arith.constant 0 : i32
    %c0_i32_0 = arith.constant 0 : i32
    %c0_i32_1 = arith.constant 0 : i32
    return %arg0, %c0_i32, %c0_i32_0 : i32, i32, i32
  }
  func.func @transform_6(%arg0: i32) -> (i32, i32, i32) {
    %c0_i32 = arith.constant 0 : i32
    %c0_i32_0 = arith.constant 0 : i32
    %c0_i32_1 = arith.constant 0 : i32
    return %arg0, %c0_i32, %c0_i32_0 : i32, i32, i32
  }
  func.func @transform_7(%arg0: i32) -> (i32, i32, i32) {
    %c0_i32 = arith.constant 0 : i32
    %c0_i32_0 = arith.constant 0 : i32
    %c0_i32_1 = arith.constant 0 : i32
    return %arg0, %c0_i32, %c0_i32_0 : i32, i32, i32
  }
  func.func @transform_8(%arg0: i32) -> (i32, i32, i32) {
    %c0_i32 = arith.constant 0 : i32
    %c0_i32_0 = arith.constant 0 : i32
    %c0_i32_1 = arith.constant 0 : i32
    return %arg0, %c0_i32, %c0_i32_0 : i32, i32, i32
  }
  func.func @transform_9(%arg0: i32) -> (i32, i32, i32) {
    %c0_i32 = arith.constant 0 : i32
    %c0_i32_0 = arith.constant 0 : i32
    %c0_i32_1 = arith.constant 0 : i32
    return %arg0, %c0_i32, %c0_i32_0 : i32, i32, i32
  }
}

</mosaic_0001>

<bundles_post_ra>
// kernel: tpu_custom_call.1
= control target key start
LH: loop header
LB: loop body
LE: loop exit
PB: predicated region body
PF: predicated region fallthrough
CT: control target
= control target key end

     0   :  { %s2585_s0 = inlined_call_operand.hbm [shape: f32[16,32], index: 0, kind: input, shape index: {}]   ;;  %s2586_s1 = inlined_call_operand.vmem [shape: f32[2,4,8,8], index: 1, kind: input, shape index: {}]   ;;  %s2587_s2 = inlined_call_operand.vmem [shape: bf16[2,32,96], index: 2, kind: input, shape index: {}]   ;;  %s2588_s3 = inlined_call_operand.hbm [shape: f32[2,1,96], index: 3, kind: input, shape index: {}]   ;;  %s2589_s4 = inlined_call_operand.hbm [shape: bf16[2,32,32], index: 4, kind: input, shape index: {}]   ;;  %s2590_s5 = inlined_call_operand.hbm [shape: f32[2,8,32], index: 5, kind: input, shape index: {}]   ;;  %s2591_s6 = inlined_call_operand.hbm [shape: bf16[2,32,64], index: 6, kind: input, shape index: {}]   ;;  %s2592_s7 = inlined_call_operand.vmem [shape: f32[2,1,64], index: 7, kind: input, shape index: {}]   ;;  %s2593_s8 = inlined_call_operand.vmem [shape: bf16[2,64,32], index: 8, kind: input, shape index: {}]   ;;  %s2594_s9 = inlined_call_operand.hbm [shape: f32[2,16,32], index: 9, kind: output, shape index: {}]  }
   0x1   :  { %2604 = sst [smem:[#allocation24_spill]] %s2585_s0 }
   0x2   :  { %2605 = sst [smem:[#allocation25_spill]] %s2588_s3 }
   0x3   :  { %2606 = sst [smem:[#allocation26_spill]] %s2590_s5 }
   0x4   :  { %2607 = sst [smem:[#allocation27_spill]] %s2594_s9 }
   0x5   :  { %14 = vsyncpa [#allocation4], 0 }
   0x6   :  { %15 = vsyncpa [#allocation7], 0 }
   0x7   :  { %17 = vsyncpa [#allocation7 + $0x1], 0 }
   0x8   :  { %18 = vsyncpa [#allocation10], 0 }
   0x9   :  { %20 = vsyncpa [#allocation10 + $0x1], 0 }
   0xa   :  { %21 = vsyncpa [#allocation5], 0 }
   0xb   :  { %23 = vsyncpa [#allocation5 + $0x1], 0  ;;  %s2123_s30 = smov 0   ;;  %s2125_s10 = smov 0  }
   0xc   :  { %s2127_s11 = smov 0   ;;  %s2129_s12 = smov 0  }
   0xd LB: > { %2608 = sst [smem:[#allocation17_spill]] %s2041_s30  ;;  %s2144_s13 = sadd.s32 4294967295, %s2053_s12   ;;  %s2053_s12 = sphi %s2129_s12, %s2633_s12   ;;  %s2049_s11 = sphi %s2127_s11, %s2635_s11   ;;  %s2045_s10 = sphi %s2125_s10, %s2637_s10   ;;  %s2041_s30 = sphi %s2123_s30, %s2636_s30  }
   0xe   : > { %2609 = sst [smem:[#allocation18_spill]] %s2049_s11  ;;  %s1570_s14 = sadd.s32 4294967294, %s2053_s12  }
   0xf   : > { %2610 = sst [smem:[#allocation19_spill]] %s2053_s12  ;;  %s2148_s15 = sadd.s32 1, %s2053_s12  }
  0x10   : > { %2611 = sst [smem:[#allocation20_spill]] %s2148_s15  ;;  %s104_s16 = sadd.s32 1, %s2049_s11 }
  0x11   : > { %s101_s17 = ssub.s32 %s2053_s12, %s2148_s15  ;;  %p111_p0 = scmp.ne.s32.totalorder %s2049_s11, %s2045_s10 }
  0x12   : > { %p102_p1 = scmp.eq.s32.totalorder %s101_s17, 0  ;;  %p112_p2 = scmp.eq.s32.totalorder %s2053_s12, 0 }
  0x13   : > { %p117_p3 = scmp.ne.s32.totalorder %s2045_s10, %s2041_s30  ;;  %p271_p4 = scmp.eq.s32.totalorder %s2144_s13, 1 }
  0x14   : > { %s2160_s18 = scalar_select %p102_p1, %s2049_s11, %s104_s16  }
  0x15   : > { %p2162_p5 = por %p112_p2, %p111_p0  ;;  %p2166_p6 = por %p271_p4, %p111_p0 }
  0x16   : > { %2612 = sst [smem:[#allocation21_spill]] %s2160_s18  ;;  %p277_p7 = scmp.eq.s32.totalorder %s1570_s14, 1 }
  0x17   : > { %s2614_s20 = scalar_select %p2166_p6, 1, 0 }
  0x18   : > { %p1716_p10 = scmp.lt.s32.totalorder %s2053_s12, 2  ;;  %p2176_p11 = por %p277_p7, %p117_p3 }
  0x19   : > { %2615 = sst [smem:[#allocation22_spill]] %s2614_s20  ;;  %s2182_s23 = sand.u32 1, %s2049_s11  }
  0x1a   : > { %s2616_s21 = scalar_select %p2176_p11, 1, 0 }
  0x1b   : > { %s2618_s3 = sld [smem:[#allocation25_spill]]  ;;  %s325_s28 = scalar_lea.vmem [#allocation6], %s2182_s23 }
  0x1c   : > { %2617 = sst [smem:[#allocation23_spill]] %s2616_s21  ;;  %s332_s29 = sshll.u32 %s325_s28, 4  ;;  %s333_s29 = int_to_ptr.vmem [resolvable:$true] %s332_s29 }
  0x1d   : > { %p2191_p12 = pnand %p1716_p10, %p2162_p5  ;;  %s1574_s16 = sshll.u32 %s2182_s23, 4 }
  0x1e   : > { %s343_s17 = scalar_lea.vmem [#allocation8], %s1574_s16  ;;  %s2620_s18 = sand.u32 1, %s2053_s12  }
  0x1f   : > { %s351_s22 = sshll.u32 %s343_s17, 4  ;;  %s2198_s24 = scalar_lea.sflag [#allocation7], %s2620_s18  ;;  %s2214_s22 = int_to_ptr.vmem [resolvable:$true] %s351_s22 }
  0x20   : > { %p1833_p0 = pneg %p2191_p12 }
  0x21   : > { %s328_s26 = scalar_lea.hbm %s2618_s3, %s2053_s12  ;;  %s1836_s11 = scalar_lea.hbm %s2618_s3, 2 }
  0x22   : > { %s330_s27 = sshll.u32 %s328_s26, 4  ;;  %s331_s27 = int_to_ptr.hbm [resolvable:$true] %s330_s27 }
  0x23   : > { %s1829_s25 = sshra.s32 %s331_s27, 4  ;;  %s1830_s25 = int_to_ptr.hbm [resolvable:$true] %s1829_s25 }
  0x24   : > { %s1831_s26 = scalar_lea.hbm %s1830_s25, 1  ;;  %p1837_p4 = scmp.lt.s32.totalorder %s1830_s25, %s2618_s3 }
  0x25   : > { %p1832_p13 = scmp.ne.s32.totalorder %s1830_s25, %s1831_s26  ;;  %p1838_p5 = scmp.lt.s32.totalorder %s1836_s11, %s1831_s26 }
  0x27   : > { %p1834_p1 = pnand %p1833_p0, %p1832_p13  ;;  %p1839_p7 = por %p1838_p5, %p1837_p4 }
  0x29   : > { %p1835_p2 = pneg %p1834_p1 }
  0x2b   : > { %p1840_p10 = pnand %p1839_p7, %p1835_p2 }
  0x2d   : > { %1843 = shalt.err (!%p1840_p10)
}
  0x2e   : > { %1701 = dma.hbm_to_vmem [thread:$0]  (!%p2191_p12), %s331_s27, 16, %s333_s29, %s2198_s24  }
  0x2f   : > { %s384_s18 = scalar_lea.vmem [#allocation11], %s1574_s16  ;;  %s1577_s15 = sshll.u32 %s2182_s23, 3 }
  0x30   : > { %s392_s17 = sshll.u32 %s384_s18, 4  ;;  %s1578_s21 = sshll.u32 %s2053_s12, 3  ;;  %s2216_s17 = int_to_ptr.vmem [resolvable:$true] %s392_s17 }
  0x31   : > { %s2621_s5 = sld [smem:[#allocation26_spill]]  ;;  %s365_s28 = scalar_lea.vmem [#allocation9], %s1577_s15 }
  0x32   : > { %s373_s3 = sshll.u32 %s365_s28, 4  ;;  %s2622_s20 = sand.u32 1, %s2053_s12   ;;  %s374_s3 = int_to_ptr.vmem [resolvable:$true] %s373_s3 }
  0x33   : > { %s2225_s27 = scalar_lea.sflag [#allocation10], %s2622_s20 }
  0x37   : > { %s369_s26 = scalar_lea.hbm %s2621_s5, %s1578_s21  ;;  %s1866_s21 = scalar_lea.hbm %s2621_s5, 16 }
  0x38   : > { %s371_s19 = sshll.u32 %s369_s26, 4  ;;  %s372_s19 = int_to_ptr.hbm [resolvable:$true] %s371_s19 }
  0x39   : > { %s1859_s29 = sshra.s32 %s372_s19, 4  ;;  %s1860_s29 = int_to_ptr.hbm [resolvable:$true] %s1859_s29 }
  0x3a   : > { %s1861_s16 = scalar_lea.hbm %s1860_s29, 8  ;;  %p1867_p4 = scmp.lt.s32.totalorder %s1860_s29, %s2621_s5 }
  0x3b   : > { %p1862_p13 = scmp.ne.s32.totalorder %s1860_s29, %s1861_s16  ;;  %p1868_p5 = scmp.lt.s32.totalorder %s1866_s21, %s1861_s16 }
  0x3d   : > { %p1864_p1 = pnand %p1862_p13, %p1833_p0  ;;  %p1869_p7 = por %p1868_p5, %p1867_p4 }
  0x3f   : > { %p1865_p2 = pneg %p1864_p1 }
  0x41   : > { %p1870_p10 = pnand %p1869_p7, %p1865_p2 }
  0x43   : > { %1873 = shalt.err (!%p1870_p10)
}
  0x44   : > { %1707 = dma.hbm_to_vmem [thread:$0]  (!%p2191_p12), %s372_s19, 128, %s374_s3, %s2225_s27  }
  0x45   : > { %p118_p13 = scmp.eq.s32.totalorder %s2144_s13, 0  ;;  %p1571_p1 = scmp.ge.s32.totalorder %s2053_s12, 1 }
  0x46   : > { %p284_p9 = scmp.lt.s32.totalorder %s2053_s12, 3  ;;  %s2623_s0 = sld [smem:[#allocation24_spill]] }
  0x47   : > { %p2250_p2 = por %p118_p13, %p117_p3  ;;  %s2055_s3 = smov [#allocation3]  }
  0x48   : > { %p2254_p4 = pnand %p1571_p1, %p284_p9  ;;  %s297_s19 = sshll.u32 %s2055_s3, 4  ;;  %s298_s19 = int_to_ptr.vmem [resolvable:$true] %s297_s19 }
  0x49   : > { %s1665_s16 = sshll.u32 %s2053_s12, 4  ;;  %s2056_s15 = smov 128  }
  0x4a   : > { %p1694_p5 = pneg %p2254_p4  ;;  %s348_s21 = scalar_lea.hbm %s2589_s4, %s1665_s16 }
  0x4b   : > { %s349_s11 = sshll.u32 %s348_s21, 4  ;;  %s2057_s20 = smov 8   ;;  %s350_s11 = int_to_ptr.hbm [resolvable:$true] %s349_s11 }
  0x4c   : > { %s295_s26 = sshll.u32 %s2623_s0, 4  ;;  %p1695_p7 = pnand %p1694_p5, %p118_p13  ;;  %s296_s26 = int_to_ptr.hbm [resolvable:$true] %s295_s26 }
  0x4d   : > { %s389_s3 = scalar_lea.hbm %s2591_s6, %s1665_s16  ;;  %s1919_s5 = sshra.s32 %s350_s11, 4  ;;  %s1920_s5 = int_to_ptr.hbm [resolvable:$true] %s1919_s5 }
  0x4e   : > { %1697 = dma.hbm_to_vmem [thread:$0]  (!%p1695_p7), %s296_s26, 256, %s298_s19, [#allocation4], %s2056_s15, %s2056_s15, %s2057_s20  }
  0x4f   : > { %s1921_s30 = scalar_lea.hbm %s1920_s5, 16  ;;  %s1926_s18 = scalar_lea.hbm %s2589_s4, 32 }
  0x50   : > { %p1922_p3 = scmp.ne.s32.totalorder %s1920_s5, %s1921_s30  ;;  %p1927_p1 = scmp.lt.s32.totalorder %s1920_s5, %s2589_s4 }
  0x51   : > { %p1928_p5 = scmp.lt.s32.totalorder %s1926_s18, %s1921_s30 }
  0x52   : > { %p1924_p9 = pnand %p1922_p3, %p1833_p0 }
  0x53   : > { %p1929_p7 = por %p1928_p5, %p1927_p1 }
  0x54   : > { %p1925_p10 = pneg %p1924_p9 }
  0x56   : > { %p1930_p8 = pnand %p1929_p7, %p1925_p10 }
  0x58   : > { %1933 = shalt.err (!%p1930_p8)
}
  0x59   : > { %s2058_s0 = smov 64   ;;  %s2059_s26 = smov 4  }
  0x5a   : > { %1704 = dma.hbm_to_vmem [thread:$0]  (!%p2191_p12), %s350_s11, 256, %s2214_s22, %s2198_s24, %s2058_s0, %s2058_s0, %s2059_s26  }
  0x5b   : > { %s390_s19 = sshll.u32 %s389_s3, 4  ;;  %s1956_s30 = scalar_lea.hbm %s2591_s6, 32  ;;  %s391_s19 = int_to_ptr.hbm [resolvable:$true] %s390_s19 }
  0x5c   : > { %s1949_s12 = sshra.s32 %s391_s19, 4  ;;  %s1950_s12 = int_to_ptr.hbm [resolvable:$true] %s1949_s12 }
  0x5d   : > { %s1951_s16 = scalar_lea.hbm %s1950_s12, 16  ;;  %p1957_p8 = scmp.lt.s32.totalorder %s1950_s12, %s2591_s6 }
  0x5e   : > { %p1952_p3 = scmp.ne.s32.totalorder %s1950_s12, %s1951_s16  ;;  %p1958_p10 = scmp.lt.s32.totalorder %s1956_s30, %s1951_s16 }
  0x60   : > { %p1954_p9 = pnand %p1952_p3, %p1833_p0  ;;  %p1959_p5 = por %p1958_p10, %p1957_p8 }
  0x62   : > { %p1955_p1 = pneg %p1954_p9 }
  0x64   : > { %p1960_p7 = pnand %p1959_p5, %p1955_p1 }
  0x66   : > { %1963 = shalt.err (!%p1960_p7)
}
  0x67   : > { %1710 = dma.hbm_to_vmem [thread:$0]  (!%p2191_p12), %s391_s19, 256, %s2216_s17, %s2225_s27, %s2058_s0, %s2058_s0, %s2059_s26  }
  0x68   : > { %418 = sbr.rel (%p2254_p4) target bundleno = 2646 (0xa56), region = 56 }
  0x6d   : > { %2024 = dma.done.wait (%p118_p13), [#allocation4], 256  }
  0x6e   : > { %2026 = vsyncadd (%p118_p13), [#allocation4], 4294967040  ;;  %s425_s22 = sand.u32 1, %s2144_s13   ;;  %s2303_s24 = sand.u32 1, %s2045_s10  }
  0x6f   : > { %s426_s14 = scalar_lea.sflag [#allocation7], %s425_s22  ;;  %s428_s11 = scalar_lea.vmem [#allocation6], %s2303_s24 }
  0x70   : > { %2028 = dma.done.wait (%p2250_p2), %s426_s14, 272  }
  0x71   : > { %2030 = vsyncadd (%p2250_p2), %s426_s14, 4294967024  ;;  %s2311_s17 = sshll.u32 %s2303_s24, 4  ;;  %s1585_s27 = sshll.u32 %s2303_s24, 3 }
  0x72   : > { %s438_s29 = scalar_lea.vmem [#allocation8], %s2311_s17  ;;  %s445_s25 = scalar_lea.sflag [#allocation10], %s425_s22 }
  0x73   : > { %s2315_s3 = scalar_lea.vmem [#allocation9], %s1585_s27 }
  0x74   : > { %2032 = dma.done.wait (%p2250_p2), %s445_s25, 384  }
  0x75   : > { %2034 = vsyncadd (%p2250_p2), %s445_s25, 4294966912  ;;  %p521_p12 = scmp.lt.s32.totalorder %s2144_s13, 1  ;;  %s458_s15 = scalar_lea.vmem [#allocation11], %s2311_s17 }
  0x76   : > { %s2343_s20 = scalar_lea.vmem [#allocation12], %s2311_s17  ;;  %p2626_p0 = scmp.ne.s32.totalorder %s2144_s13, 0 }
  0x77   : > { %s2323_s23 = scalar_select %p521_p12, %s2144_s13, 1 }
  0x78   : > { %538 = sbr.rel (%p2626_p0) target bundleno = 128 (0x80), region = 80 }
  0x79   : > { %s1667_s18 = sshll.u32 %s2323_s23, 4  ;;  %s528_s26 = scalar_lea.vmem %s2592_s7, %s2323_s23 }
  0x7a   : > { %s2333_s28 = scalar_lea.vmem %s2587_s2, %s1667_s18  ;;  %s1668_s16 = sshll.u32 %s2323_s23, 5 }
  0x7b   : > { %s2339_s30 = scalar_lea.vmem %s2593_s8, %s1668_s16 }
  0x7d   : > { %v539_v0 = vld [vmem:[#allocation3] sm:$0xff]  ;;  %vm541_vm0 = vcmask 261120   ;;  %v540_v1 = vld [vmem:[#allocation3 + $0x8] sm:$0xff] }
  0x7e   : > { %542 = vst.msk [vmem:[#allocation2] sm:$0xff] %vm541_vm0, %v539_v0 }
  0x7f   : > { %543 = vst.msk [vmem:[#allocation2 + $0x8] sm:$0xff] %vm541_vm0, %v540_v1 }
  0x80 PF: > { %vm547_vm1 = vcmask 261120   ;;  %v2060_v6 = vmov 32.0   ;;  %v1670_v23 = vld [vmem:[%s2333_s28 + $0x8] sm:$0xff]  ;;  %v1669_v25 = vld [vmem:[%s2333_s28] sm:$0xff]  ;;  %s2061_s22 = smov 96   ;;  %s2062_s14 = smov 104  }
  0x81   : > { %1787 = vrcp.f32 %v2060_v6  ;;  %635 = vmatpush.bf16.msra.mxu0 %v1670_v23  ;;  %v2368_v42 = vld [vmem:[%s2315_s3] sm:$0xff]  ;;  %v1785_v55 = vld [vmem:[%s428_s11] ss:$0 sm:$0xff]  ;;  %vm694_vm9 = vcmask 1043456   ;;  %vm690_vm10 = vcmask 64512   ;;  %s2063_s25 = smov 64  }
  0x82   : > { %v599_v45 = vperm.slane %v2368_v42, 1  ;;  %v602_v50 = vperm.slane %v2368_v42, 2  ;;  %s2064_s3 = smov 120   ;;  %s2065_s18 = smov 112   ;;  %vm928_vm11 = vcmask 130048   ;;  %vm930_vm12 = vcmask 195584  }
  0x83   : > { %s2066_s5 = smov 48   ;;  %s2067_s9 = smov 56  }
  0x84   : > { %s2070_s12 = smov 24   ;;  %s2071_s28 = smov 16  }
  0x85   : > { %v2347_v2 = vld [vmem:[#allocation2] sm:$0xff]  ;;  %636 = vmatpush.bf16.msra.mxu0 %v1669_v25  ;;  %s1679_s23 = sshll.u32 %s2144_s13, 4  ;;  %s1378_s13 = scalar_lea.sflag [#allocation5], %s2303_s24 }
  0x86   : > { %v548_v3 = vsel %vm547_vm1, %v2347_v2, 0.0  ;;  %v2351_v4 = vld [vmem:[#allocation2 + $0x8] sm:$0xff] }
  0x87   : > { %549 = vadd.xlane.f32.xlu0 %v548_v3  ;;  %v551_v5 = vsel %vm547_vm1, %v2351_v4, 0.0  ;;  %v1788_v7 = vpop.eup %1787 }
  0x88   : > { %v555_v8 = vmul.f32 32.0, %v1788_v7  ;;  %vm559_vm2 = vweird.f32 %v1788_v7 }
  0x8a   : > { %v556_v9 = vsub.f32 1.0, %v555_v8 }
  0x8c   : > { %v557_v10 = vmul.f32 %v1788_v7, %v556_v9 }
  0x8e   : > { %v558_v11 = vadd.f32 %v1788_v7, %v557_v10 }
  0x8f   : > { %552 = vadd.xlane.f32.xlu0 %v551_v5 }
  0x90   : > { %v2355_v12 = vsel %vm559_vm2, %v1788_v7, %v558_v11 }
  0xfa   : > { %v550_v13 = vpop.xlane.xlu0 %549 }
  0xfb   : > { %v561_v14 = vmul.f32 %v2355_v12, %v550_v13  ;;  %v689_v13 = vld [vmem:[%s2586_s1] sm:$0xff] }
  0xfd   : > { %v563_v15 = vsub.f32 %v2347_v2, %v561_v14 }
  0xff   : > { %v565_v16 = vmul.f32 %v563_v15, %v563_v15 }
 0x101   : > { %v567_v17 = vsel %vm547_vm1, %v565_v16, 0.0 }
 0x102   : > { %568 = vadd.xlane.f32.xlu1 %v567_v17  ;;  %v553_v18 = vpop.xlane.xlu0 %552 }
 0x103   : > { %v562_v19 = vmul.f32 %v2355_v12, %v553_v18 }
 0x105   : > { %v564_v20 = vsub.f32 %v2351_v4, %v562_v19 }
 0x107   : > { %v566_v21 = vmul.f32 %v564_v20, %v564_v20 }
 0x109   : > { %v570_v22 = vsel %vm547_vm1, %v566_v21, 0.0 }
 0x10a   : > { %571 = vadd.xlane.f32.xlu1 %v570_v22 }
 0x175   : > { %v569_v24 = vpop.xlane.xlu1 %568 }
 0x176   : > { %v573_v26 = vmul.f32 %v569_v24, %v2355_v12 }
 0x178   : > { %v575_v27 = vadd.f32 1e-05, %v573_v26 }
 0x17a   : > { %1789 = vrsqrt.f32 %v575_v27  ;;  %vm583_vm4 = vweird.f32 %v575_v27 }
 0x17d   : > { %v572_v28 = vpop.xlane.xlu1 %571 }
 0x17e   : > { %v574_v29 = vmul.f32 %v572_v28, %v2355_v12 }
 0x180   : > { %v1790_v30 = vpop.eup %1789  ;;  %v576_v31 = vadd.f32 1e-05, %v574_v29 }
 0x181   : > { %v578_v32 = vmul.f32 %v1790_v30, %v575_v27  ;;  %vm584_vm3 = vweird.f32 %v1790_v30 }
 0x182   : > { %1791 = vrsqrt.f32 %v576_v31  ;;  %vm585_vm5 = vmor %vm583_vm4, %vm584_vm3  ;;  %vm593_vm7 = vweird.f32 %v576_v31  ;;  %vm1353_vm4 = vcmask 523264  }
 0x183   : > { %v579_v33 = vmul.f32 %v1790_v30, %v578_v32 }
 0x185   : > { %v580_v34 = vmul.f32 0.5, %v579_v33 }
 0x187   : > { %v581_v35 = vsub.f32 1.5, %v580_v34 }
 0x188   : > { %v1792_v36 = vpop.eup %1791 }
 0x189   : > { %v582_v37 = vmul.f32 %v1790_v30, %v581_v35  ;;  %v588_v38 = vmul.f32 %v1792_v36, %v576_v31  ;;  %vm594_vm6 = vweird.f32 %v1792_v36 }
 0x18a   : > { %vm595_vm8 = vmor %vm593_vm7, %vm594_vm6 }
 0x18b   : > { %v589_v39 = vmul.f32 %v1792_v36, %v588_v38  ;;  %v586_v40 = vsel %vm585_vm5, %v1790_v30, %v582_v37 }
 0x18c   : > { %v597_v44 = vmul.f32 %v586_v40, %v563_v15 }
 0x18d   : > { %v590_v41 = vmul.f32 0.5, %v589_v39 }
 0x18e   : > { %v600_v49 = vmul.f32 %v599_v45, %v597_v44 }
 0x18f   : > { %v591_v43 = vsub.f32 1.5, %v590_v41 }
 0x190   : > { %v603_v52 = vadd.f32 %v602_v50, %v600_v49  ;;  %v1610_v49 = vld [vmem:[%s2586_s1 + $0x18] sm:$0xff] }
 0x191   : > { %v592_v46 = vmul.f32 %v1792_v36, %v591_v43 }
 0x193   : > { %v596_v47 = vsel %vm595_vm8, %v1792_v36, %v592_v46 }
 0x194   : > { %v598_v48 = vmul.f32 %v596_v47, %v564_v20 }
 0x196   : > { %v601_v51 = vmul.f32 %v599_v45, %v598_v48 }
 0x198   : > { %v604_v53 = vadd.f32 %v602_v50, %v601_v51 }
 0x19a   : > { %v605_v54 = vpack.c.bf16 %v604_v53, %v603_v52 }
 0x19c   : > { %1601 = vmatmul.msk.bf16.vlgmr.msra.gmra.mxu0 %vm547_vm1, %v605_v54 }
 0x219   : > { %v638_v56 = vpop.f32.mrf.mxu0 }
 0x21a   : > { %v639_v57 = vadd.f32 %v1785_v55, %v638_v56 }
 0x21c   : > { %647 = vrot.lane.b32.xlu2 %v639_v57, %s2061_s22  ;;  %v643_v62 = vpack.c.bf16 %v639_v57, %v639_v57 }
 0x21e   : > { %v724_v63 = vunpack.c.l.b16 %v643_v62 }
 0x220   : > { %v2375_v0 = vpack.c.b16 %v724_v63, %v724_v63  ;;  %v1604_v63 = vld [vmem:[%s2586_s1 + $0x8] sm:$0xff] }
 0x221   : > { %v640_v58 = vpop.f32.mrf.mxu0 }
 0x222   : > { %v641_v59 = vadd.f32 %v1785_v55, %v640_v58 }
 0x224   : > { %649 = vrot.lane.b32.xlu2 %v641_v59, %s2061_s22  ;;  %v2395_v25 = vpack.c.bf16 %v641_v59, %v641_v59 }
 0x226   : > { %v971_v26 = vunpack.c.l.b16 %v2395_v25 }
 0x228   : > { %v2399_v27 = vpack.c.b16 %v971_v26, %v971_v26 }
 0x276   : > { %v648_v60 = vpop.permute.xlu2 %647 }
 0x277   : > { %653 = vxpose.xlu0.b32.start [1/2] (short) (narrow) %v648_v60, 32 }
 0x27e   : > { %v650_v61 = vpop.permute.xlu2 %649 }
 0x27f   : > { %654 = vxpose.xlu0.b32.end [2/2] (short) (narrow) %v650_v61, 32 }
 0x2fd   : > { %861 = vrot.lane.b32.xlu0 %v2375_v0, %s2062_s14 }
 0x31b   : > { %v669_v1 = vpop.trf.xlu0 }
 0x31c   : > { %v685_v3 = vpack.c.bf16 %v669_v1, %v669_v1 }
 0x31e   : > { %v696_v5 = vsel %vm694_vm9, %v685_v3, 0  ;;  %v935_v40 = vunpack.c.l.b16 %v685_v3 }
 0x31f   : > { %705 = vmatpush.bf16.msra.mxu1 %v696_v5 }
 0x320   : > { %v936_v43 = vpack.c.b16 %v935_v40, %v935_v40 }
 0x322   : > { %1602 = vmatmul.msk.bf16.vlgmr.msra.gmra.mxu1 %vm690_vm10, %v643_v62 }
 0x323   : > { %v670_v6 = vpop.trf.xlu0 }
 0x324   : > { %v686_v18 = vpack.c.bf16 %v670_v6, %v670_v6 }
 0x326   : > { %v999_v19 = vunpack.c.l.b16 %v686_v18  ;;  %v755_v23 = vsel %vm694_vm9, %v686_v18, 0 }
 0x327   : > { %764 = vmatpush.bf16.msra.mxu3 %v755_v23 }
 0x328   : > { %v1000_v20 = vpack.c.b16 %v999_v19, %v999_v19 }
 0x32b   : > { %v671_v7 = vpop.trf.xlu0 }
 0x32c   : > { %v687_v21 = vpack.c.bf16 %v671_v7, %v671_v7  ;;  %v1616_v7 = vld [vmem:[%s2586_s1 + $0x28] sm:$0xff] }
 0x32e   : > { %v1060_v22 = vunpack.c.l.b16 %v687_v21  ;;  %v811_v39 = vsel %vm694_vm9, %v687_v21, 0 }
 0x330   : > { %v1061_v24 = vpack.c.b16 %v1060_v22, %v1060_v22  ;;  %v1607_v22 = vld [vmem:[%s2586_s1 + $0x10] sm:$0xff] }
 0x333   : > { %v672_v8 = vpop.trf.xlu0 }
 0x334   : > { %v688_v9 = vpack.c.bf16 %v672_v8, %v672_v8 }
 0x336   : > { %v867_v10 = vsel %vm694_vm9, %v688_v9, 0  ;;  %v1121_v28 = vunpack.c.l.b16 %v688_v9 }
 0x337   : > { %876 = vmatpush.bf16.msrb.mxu0 %v867_v10 }
 0x338   : > { %v1122_v29 = vpack.c.b16 %v1121_v28, %v1121_v28 }
 0x36f   : > { %v862_v11 = vpop.permute.xlu0 %861 }
 0x370   : > { %1611 = vmatmul.msk.bf16.vlgmr.msrb.gmra.mxu0 %vm690_vm10, %v862_v11 }
 0x39f   : > { %v707_v14 = vpop.f32.mrf.mxu1 }
 0x3a0   : > { %v708_v15 = vadd.f32 %v707_v14, %v689_v13  ;;  %v1622_v14 = vld [vmem:[%s2586_s1 + $0x38] sm:$0xff] }
 0x3a2   : > { %v711_v16 = vsel %vm690_vm10, %v708_v15, -inf }
 0x3a3   : > { %712 = vmax.xlane.f32.xlu1 %v711_v16 }
 0x3a7   : > { %v709_v17 = vpop.f32.mrf.mxu1 }
 0x3bc   : > { %726 = vrot.lane.b32.xlu1 %v2375_v0, %s2063_s25 }
 0x3c4   : > { %749 = vrot.lane.b32.xlu1 %v2375_v0, %s2064_s3 }
 0x3cc   : > { %805 = vrot.lane.b32.xlu1 %v2375_v0, %s2065_s18 }
 0x3d4   : > { %1001 = vrot.lane.b32.xlu1 %v1000_v20, %s2064_s3 }
 0x3dc   : > { %1062 = vrot.lane.b32.xlu1 %v1061_v24, %s2064_s3 }
 0x3e4   : > { %996 = vrot.lane.b32.xlu1 %v2399_v27, %s2064_s3 }
 0x3ec   : > { %1123 = vrot.lane.b32.xlu1 %v1122_v29, %s2064_s3 }
 0x3ed   : > { %v878_v30 = vpop.f32.mrf.mxu0 }
 0x3ee   : > { %v879_v50 = vadd.f32 %v1610_v49, %v878_v30 }
 0x3f0   : > { %v882_v51 = vsel %vm690_vm10, %v879_v50, -inf }
 0x3f5   : > { %v880_v31 = vpop.f32.mrf.mxu0 }
 0x416   : > { %v713_v32 = vpop.xlane.xlu1 %712 }
 0x417   : > { %v714_v33 = vsub.f32 %v708_v15, %v713_v32 }
 0x419   : > { %v715_v34 = vmul.f32 1.442695, %v714_v33 }
 0x41b   : > { %1793 = vpow2.f32 %v715_v34 }
 0x421   : > { %v1794_v35 = vpop.eup %1793 }
 0x422   : > { %v717_v36 = vsel %vm690_vm10, %v1794_v35, 0.0 }
 0x423   : > { %718 = vadd.xlane.f32.xlu2 %v717_v36 }
 0x42e   : > { %v727_v37 = vpop.permute.xlu1 %726 }
 0x42f   : > { %v732_v38 = vsel %vm694_vm9, %v727_v37, 0 }
 0x430   : > { %741 = vmatpush.bf16.msra.mxu2 %v732_v38 }
 0x434   : > { %820 = vmatpush.bf16.msrb.mxu2 %v811_v39 }
 0x436   : > { %v750_v41 = vpop.permute.xlu1 %749 }
 0x437   : > { %1605 = vmatmul.msk.bf16.vlgmr.msra.gmra.mxu3 %vm690_vm10, %v750_v41 }
 0x43b   : > { %937 = vrot.lane.b32.xlu2 %v936_v43, %s2064_s3  ;;  %s2068_s3 = smov 40  }
 0x43e   : > { %v806_v44 = vpop.permute.xlu1 %805 }
 0x443   : > { %1057 = vrot.lane.b32.xlu2 %v2399_v27, %s2065_s18 }
 0x446   : > { %v1002_v45 = vpop.permute.xlu1 %1001 }
 0x447   : > { %v1007_v46 = vsel %vm694_vm9, %v1002_v45, 0 }
 0x448   : > { %1016 = vmatpush.bf16.msra.mxu0 %v1007_v46 }
 0x44b   : > { %1118 = vrot.lane.b32.xlu2 %v2399_v27, %s2062_s14 }
 0x44e   : > { %v1063_v47 = vpop.permute.xlu1 %1062 }
 0x44f   : > { %v1068_v62 = vsel %vm694_vm9, %v1063_v47, 0 }
 0x456   : > { %v997_v48 = vpop.permute.xlu1 %996 }
 0x457   : > { %1617 = vmatmul.msk.bf16.vlgmr.msra.gmra.mxu0 %vm690_vm10, %v997_v48 }
 0x45e   : > { %v1124_v52 = vpop.permute.xlu1 %1123 }
 0x45f   : > { %v1129_v53 = vsel %vm694_vm9, %v1124_v52, 0  ;;  %v1619_v52 = vld [vmem:[%s2586_s1 + $0x30] sm:$0xff] }
 0x460   : > { %1138 = vmatpush.bf16.msrb.mxu0 %v1129_v53 }
 0x474   : > { %883 = vmax.xlane.f32.xlu2 %v882_v51 }
 0x496   : > { %v719_v54 = vpop.xlane.xlu2 %718 }
 0x497   : > { %1795 = vrcp.f32 %v719_v54 }
 0x49d   : > { %v1796_v55 = vpop.eup %1795 }
 0x49e   : > { %v938_v56 = vpop.permute.xlu2 %937  ;;  %v721_v57 = vmul.f32 %v1796_v55, %v1794_v35 }
 0x49f   : > { %v943_v59 = vsel %vm694_vm9, %v938_v56, 0 }
 0x4a0   : > { %v722_v58 = vpack.c.bf16 %v721_v57, %v721_v57 }
 0x4a2   : > { %1603 = vmatmul.msk.bf16.vlgmr.msra.gmra.mxu2 %vm690_vm10, %v722_v58 }
 0x4a3   : > { %952 = vmatpush.bf16.msra.mxu2 %v943_v59 }
 0x4a6   : > { %v1058_v60 = vpop.permute.xlu2 %1057 }
 0x4ae   : > { %v1119_v61 = vpop.permute.xlu2 %1118 }
 0x4af   : > { %1623 = vmatmul.msk.bf16.vlgmr.msrb.gmra.mxu0 %vm690_vm10, %v1119_v61 }
 0x4b2   : > { %1608 = vmatmul.msk.bf16.vlgmr.msrb.gmra.mxu2 %vm690_vm10, %v806_v44 }
 0x4b3   : > { %1077 = vmatpush.bf16.msrb.mxu2 %v1068_v62 }
 0x4ba   : > { %v766_v1 = vpop.f32.mrf.mxu3 }
 0x4bb   : > { %v767_v3 = vadd.f32 %v1604_v63, %v766_v1 }
 0x4bd   : > { %v770_v5 = vsel %vm690_vm10, %v767_v3, -inf }
 0x4be   : > { %771 = vmax.xlane.f32.xlu1 %v770_v5 }
 0x4c2   : > { %v768_v6 = vpop.f32.mrf.mxu3  ;;  %1614 = vmatmul.msk.bf16.vlgmr.msra.gmra.mxu2 %vm690_vm10, %v2395_v25 }
 0x4d2   : > { %1620 = vmatmul.msk.bf16.vlgmr.msrb.gmra.mxu2 %vm690_vm10, %v1058_v60 }
 0x4d4   : > { %v1018_v8 = vpop.f32.mrf.mxu0 }
 0x4d5   : > { %v1019_v9 = vadd.f32 %v1616_v7, %v1018_v8 }
 0x4d7   : > { %838 = vrot.lane.b32.xlu1 %v2375_v0, %s2066_s5  ;;  %v1022_v10 = vsel %vm690_vm10, %v1019_v9, -inf }
 0x4d8   : > { %1023 = vmax.xlane.f32.xlu2 %v1022_v10 }
 0x4dc   : > { %v1020_v11 = vpop.f32.mrf.mxu0 }
 0x4e7   : > { %v884_v19 = vpop.xlane.xlu2 %883 }
 0x4e8   : > { %v885_v23 = vsub.f32 %v879_v50, %v884_v19 }
 0x4ea   : > { %v886_v29 = vmul.f32 1.442695, %v885_v23 }
 0x4f0   : > { %782 = vrot.lane.b32.xlu2 %v2375_v0, %s2067_s9 }
 0x525   : > { %v2440_v13 = vpop.f32.mrf.mxu2 }
 0x52c   : > { %v1140_v15 = vpop.f32.mrf.mxu0 }
 0x52d   : > { %v2445_v16 = vadd.f32 %v1622_v14, %v1140_v15  ;;  %v745_v17 = vpop.f32.mrf.mxu2 }
 0x52f   : > { %v1144_v18 = vsel %vm690_vm10, %v2445_v16, -inf }
 0x530   : > { %1145 = vmax.xlane.f32.xlu2 %v1144_v18 }
 0x531   : > { %v772_v20 = vpop.xlane.xlu1 %771 }
 0x532   : > { %v773_v21 = vsub.f32 %v767_v3, %v772_v20 }
 0x534   : > { %v774_v24 = vmul.f32 1.442695, %v773_v21  ;;  %v1142_v25 = vpop.f32.mrf.mxu0 }
 0x535   : > { %v822_v26 = vpop.f32.mrf.mxu2 }
 0x536   : > { %1797 = vpow2.f32 %v774_v24  ;;  %v823_v28 = vadd.f32 %v1607_v22, %v822_v26 }
 0x537   : > { %1799 = vpow2.f32 %v886_v29 }
 0x538   : > { %v826_v30 = vsel %vm690_vm10, %v823_v28, -inf }
 0x539   : > { %827 = vmax.xlane.f32.xlu2 %v826_v30 }
 0x53c   : > { %v1798_v31 = vpop.eup %1797 }
 0x53d   : > { %v824_v32 = vpop.f32.mrf.mxu2  ;;  %v776_v33 = vsel %vm690_vm10, %v1798_v31, 0.0  ;;  %v1800_v34 = vpop.eup %1799 }
 0x53e   : > { %777 = vadd.xlane.f32.xlu1 %v776_v33  ;;  %v888_v36 = vsel %vm690_vm10, %v1800_v34, 0.0 }
 0x545   : > { %v954_v35 = vpop.f32.mrf.mxu2 }
 0x546   : > { %889 = vadd.xlane.f32.xlu1 %v888_v36 }
 0x549   : > { %v839_v37 = vpop.permute.xlu1 %838 }
 0x54a   : > { %v844_v38 = vsel %vm694_vm9, %v839_v37, 0 }
 0x54b   : > { %v1024_v39 = vpop.xlane.xlu2 %1023  ;;  %853 = vmatpush.bf16.msrb.mxu3 %v844_v38 }
 0x54c   : > { %v1025_v46 = vsub.f32 %v1019_v9, %v1024_v39 }
 0x54d   : > { %v956_v40 = vpop.f32.mrf.mxu2 }
 0x54e   : > { %v1026_v47 = vmul.f32 1.442695, %v1025_v46 }
 0x550   : > { %1801 = vpow2.f32 %v1026_v47 }
 0x551   : > { %894 = vrot.lane.b32.xlu2 %v2375_v0, %s2068_s3  ;;  %v1613_v0 = vld [vmem:[%s2586_s1 + $0x20] sm:$0xff] }
 0x552   : > { %v955_v50 = vadd.f32 %v1613_v0, %v954_v35 }
 0x553   : > { %v783_v41 = vpop.permute.xlu2 %782 }
 0x554   : > { %v788_v43 = vsel %vm694_vm9, %v783_v41, 0  ;;  %v958_v51 = vsel %vm690_vm10, %v955_v50, -inf }
 0x555   : > { %797 = vmatpush.bf16.msrb.mxu1 %v788_v43  ;;  %v1079_v44 = vpop.f32.mrf.mxu2 }
 0x556   : > { %v2461_v48 = vpop.eup %1801  ;;  %v1080_v53 = vadd.f32 %v1619_v52, %v1079_v44 }
 0x557   : > { %v1028_v49 = vsel %vm690_vm10, %v2461_v48, 0.0 }
 0x558   : > { %v1083_v54 = vsel %vm690_vm10, %v1080_v53, -inf }
 0x55d   : > { %v1081_v45 = vpop.f32.mrf.mxu2 }
 0x55f   : > { %973 = vrot.lane.b32.xlu1 %v2399_v27, %s2063_s25  ;;  %s2069_s25 = smov 8  }
 0x57a   : > { %1029 = vadd.xlane.f32.xlu2 %v1028_v49 }
 0x589   : > { %959 = vmax.xlane.f32.xlu1 %v958_v51 }
 0x591   : > { %1084 = vmax.xlane.f32.xlu1 %v1083_v54 }
 0x592   : > { %1095 = vrot.lane.b32.xlu2 %v2399_v27, %s2066_s5 }
 0x5a3   : > { %v1146_v55 = vpop.xlane.xlu2 %1145 }
 0x5a4   : > { %v1147_v17 = vsub.f32 %v2445_v16, %v1146_v55 }
 0x5a6   : > { %v1148_v19 = vmul.f32 1.442695, %v1147_v17 }
 0x5ac   : > { %v828_v56 = vpop.xlane.xlu2 %827 }
 0x5ad   : > { %v829_v57 = vsub.f32 %v823_v28, %v828_v56 }
 0x5af   : > { %v830_v58 = vmul.f32 1.442695, %v829_v57 }
 0x5b1   : > { %1803 = vpow2.f32 %v830_v58  ;;  %v778_v59 = vpop.xlane.xlu1 %777 }
 0x5b2   : > { %1805 = vrcp.f32 %v778_v59 }
 0x5b4   : > { %v895_v60 = vpop.permute.xlu2 %894 }
 0x5b5   : > { %v900_v61 = vsel %vm694_vm9, %v895_v60, 0 }
 0x5b6   : > { %909 = vmatpush.bf16.msra.mxu1 %v900_v61 }
 0x5b7   : > { %v1804_v62 = vpop.eup %1803 }
 0x5b8   : > { %v1806_v63 = vpop.eup %1805  ;;  %v832_v1 = vsel %vm690_vm10, %v1804_v62, 0.0 }
 0x5b9   : > { %v780_v3 = vmul.f32 %v1806_v63, %v1798_v31  ;;  %833 = vadd.xlane.f32.xlu1 %v832_v1  ;;  %v890_v5 = vpop.xlane.xlu1 %889 }
 0x5ba   : > { %1807 = vrcp.f32 %v890_v5 }
 0x5bb   : > { %v781_v6 = vpack.c.bf16 %v780_v3, %v780_v3 }
 0x5bd   : > { %1606 = vmatmul.msk.bf16.vlgmr.msrb.gmra.mxu1 %vm690_vm10, %v781_v6 }
 0x5c0   : > { %v1808_v7 = vpop.eup %1807 }
 0x5c1   : > { %v892_v8 = vmul.f32 %v1808_v7, %v1800_v34 }
 0x5c3   : > { %v893_v9 = vpack.c.bf16 %v892_v8, %v892_v8 }
 0x5cd   : > { %1612 = vmatmul.msk.bf16.vlgmr.msra.gmra.mxu1 %vm690_vm10, %v893_v9 }
 0x5d1   : > { %v974_v10 = vpop.permute.xlu1 %973 }
 0x5d2   : > { %v979_v11 = vsel %vm694_vm9, %v974_v10, 0  ;;  %1034 = vrot.lane.b32.xlu1 %v2399_v27, %s2067_s9  ;;  %v1672_v10 = vld [vmem:[%s438_s29 + $0x8] sm:$0xff]  ;;  %s1390_s9 = sshll.u32 %s2343_s20, 4  ;;  %s1391_s9 = int_to_ptr.vmem [resolvable:$true] %s1390_s9 }
 0x5d3   : > { %988 = vmatpush.bf16.msra.mxu3 %v979_v11  ;;  %1219 = vmatpush.bf16.msra.mxu2 %v1672_v10  ;;  %v1671_v11 = vld [vmem:[%s438_s29] sm:$0xff] }
 0x5d7   : > { %1220 = vmatpush.bf16.msra.mxu2 %v1671_v11 }
 0x5ed   : > { %v1030_v16 = vpop.xlane.xlu2 %1029 }
 0x5f5   : > { %v1096_v33 = vpop.permute.xlu2 %1095 }
 0x5f6   : > { %v1101_v35 = vsel %vm694_vm9, %v1096_v33, 0 }
 0x5fc   : > { %v960_v14 = vpop.xlane.xlu1 %959 }
 0x5fd   : > { %v961_v15 = vsub.f32 %v955_v50, %v960_v14 }
 0x5ff   : > { %v962_v18 = vmul.f32 1.442695, %v961_v15 }
 0x601   : > { %1809 = vpow2.f32 %v962_v18 }
 0x602   : > { %1811 = vpow2.f32 %v1148_v19 }
 0x604   : > { %v1085_v20 = vpop.xlane.xlu1 %1084 }
 0x605   : > { %v1086_v21 = vsub.f32 %v1080_v53, %v1085_v20 }
 0x607   : > { %v1810_v22 = vpop.eup %1809  ;;  %v1087_v23 = vmul.f32 1.442695, %v1086_v21 }
 0x608   : > { %v964_v24 = vsel %vm690_vm10, %v1810_v22, 0.0  ;;  %v1812_v25 = vpop.eup %1811 }
 0x609   : > { %1813 = vpow2.f32 %v1087_v23  ;;  %965 = vadd.xlane.f32.xlu0 %v964_v24  ;;  %v1150_v28 = vsel %vm690_vm10, %v1812_v25, 0.0 }
 0x60f   : > { %v1814_v26 = vpop.eup %1813 }
 0x610   : > { %v1089_v29 = vsel %vm690_vm10, %v1814_v26, 0.0 }
 0x611   : > { %1151 = vadd.xlane.f32.xlu0 %v1150_v28  ;;  %1090 = vadd.xlane.f32.xlu1 %v1089_v29 }
 0x625   : > { %1156 = vrot.lane.b32.xlu0 %v2399_v27, %s2068_s3 }
 0x62c   : > { %v834_v30 = vpop.xlane.xlu1 %833 }
 0x62d   : > { %1815 = vrcp.f32 %v834_v30 }
 0x62e   : > { %1817 = vrcp.f32 %v1030_v16 }
 0x633   : > { %v1816_v31 = vpop.eup %1815 }
 0x634   : > { %v836_v32 = vmul.f32 %v1816_v31, %v1804_v62  ;;  %v1818_v37 = vpop.eup %1817  ;;  %v1197_v31 = vperm.slane %v2368_v42, 0 }
 0x635   : > { %v1032_v39 = vmul.f32 %v1818_v37, %v2461_v48 }
 0x636   : > { %v837_v34 = vpack.c.bf16 %v836_v32, %v836_v32 }
 0x637   : > { %v1033_v41 = vpack.c.bf16 %v1032_v39, %v1032_v39 }
 0x638   : > { %1609 = vmatmul.msk.bf16.vlgmr.msrb.gmra.mxu3 %vm690_vm10, %v837_v34 }
 0x639   : > { %1110 = vmatpush.bf16.msrb.mxu3 %v1101_v35 }
 0x63a   : > { %v799_v36 = vpop.f32.mrf.mxu1 }
 0x642   : > { %v801_v38 = vpop.f32.mrf.mxu1 }
 0x644   : > { %v1035_v40 = vpop.permute.xlu1 %1034 }
 0x645   : > { %v1040_v27 = vsel %vm694_vm9, %v1035_v40, 0 }
 0x646   : > { %1049 = vmatpush.bf16.msrb.mxu1 %v1040_v27 }
 0x649   : > { %1618 = vmatmul.msk.bf16.vlgmr.msrb.gmra.mxu1 %vm690_vm10, %v1033_v41 }
 0x64a   : > { %v911_v43 = vpop.f32.mrf.mxu1 }
 0x652   : > { %v913_v44 = vpop.f32.mrf.mxu1 }
 0x67c   : > { %v966_v45 = vpop.xlane.xlu0 %965 }
 0x67d   : > { %1819 = vrcp.f32 %v966_v45 }
 0x683   : > { %v1820_v46 = vpop.eup %1819 }
 0x684   : > { %v968_v47 = vmul.f32 %v1820_v46, %v1810_v22  ;;  %v1091_v0 = vpop.xlane.xlu1 %1090  ;;  %v1152_v50 = vpop.xlane.xlu0 %1151 }
 0x685   : > { %1821 = vrcp.f32 %v1091_v0 }
 0x686   : > { %v969_v49 = vpack.c.bf16 %v968_v47, %v968_v47  ;;  %1823 = vrcp.f32 %v1152_v50  ;;  %v1674_v47 = vld [vmem:[%s458_s15 + $0x8] sm:$0xff] }
 0x688   : > { %1615 = vmatmul.msk.bf16.vlgmr.msra.gmra.mxu3 %vm690_vm10, %v969_v49 }
 0x689   : > { %1309 = vmatpush.bf16.msra.mxu3 %v1674_v47 }
 0x68b   : > { %v1822_v48 = vpop.eup %1821 }
 0x68c   : > { %v1093_v51 = vmul.f32 %v1822_v48, %v1814_v26  ;;  %v1824_v52 = vpop.eup %1823  ;;  %v1673_v48 = vld [vmem:[%s458_s15] sm:$0xff]  ;;  %s2627_s15 = sld [smem:[#allocation27_spill]] }
 0x68d   : > { %v1154_v53 = vmul.f32 %v1824_v52, %v1812_v25  ;;  %1310 = vmatpush.bf16.msra.mxu3 %v1673_v48 }
 0x68e   : > { %v1094_v54 = vpack.c.bf16 %v1093_v51, %v1093_v51 }
 0x68f   : > { %v1155_v57 = vpack.c.bf16 %v1154_v53, %v1154_v53 }
 0x692   : > { %s1389_s5 = scalar_lea.hbm %s2627_s15, %s1679_s23  ;;  %s1999_s18 = scalar_lea.hbm %s2627_s15, 32 }
 0x693   : > { %s1392_s22 = sshll.u32 %s1389_s5, 4  ;;  %s1393_s22 = int_to_ptr.hbm [resolvable:$true] %s1392_s22 }
 0x694   : > { %s1993_s14 = sshra.s32 %s1393_s22, 4  ;;  %s1994_s14 = int_to_ptr.hbm [resolvable:$true] %s1993_s14 }
 0x695   : > { %s1995_s11 = scalar_lea.hbm %s1994_s14, 16  ;;  %p2000_p3 = scmp.lt.s32.totalorder %s1994_s14, %s2627_s15 }
 0x696   : > { %p1996_p13 = scmp.ne.s32.totalorder %s1994_s14, %s1995_s11  ;;  %p2001_p9 = scmp.lt.s32.totalorder %s1999_s18, %s1995_s11 }
 0x697   : > { %v1157_v55 = vpop.permute.xlu0 %1156 }
 0x698   : > { %v1162_v56 = vsel %vm694_vm9, %v1157_v55, 0  ;;  %1621 = vmatmul.msk.bf16.vlgmr.msrb.gmra.mxu3 %vm690_vm10, %v1094_v54  ;;  %p1997_p2 = pnand %p1996_p13, %p2166_p6  ;;  %p2002_p1 = por %p2001_p9, %p2000_p3 }
 0x699   : > { %1171 = vmatpush.bf16.msra.mxu1 %v1162_v56 }
 0x69a   : > { %p1998_p4 = pneg %p1997_p2 }
 0x69c   : > { %1624 = vmatmul.msk.bf16.vlgmr.msra.gmra.mxu1 %vm690_vm10, %v1155_v57  ;;  %p2003_p8 = pnand %p2002_p1, %p1998_p4 }
 0x6bb   : > { %v855_v58 = vpop.f32.mrf.mxu3 }
 0x6c3   : > { %v857_v59 = vpop.f32.mrf.mxu3 }
 0x6c6   : > { %v1051_v60 = vpop.f32.mrf.mxu1 }
 0x6c7   : > { %v1770_v61 = vpack.i.bf16 %v1051_v60, %v799_v36 }
 0x6c9   : > { %1771 = vrot.lane.b32.xlu2 %v1770_v61, %s2069_s25 }
 0x6ce   : > { %v1053_v62 = vpop.f32.mrf.mxu1 }
 0x70b   : > { %v990_v63 = vpop.f32.mrf.mxu3 }
 0x713   : > { %v992_v1 = vpop.f32.mrf.mxu3 }
 0x719   : > { %v1173_v3 = vpop.f32.mrf.mxu1 }
 0x71a   : > { %v1780_v5 = vpack.i.bf16 %v1173_v3, %v911_v43 }
 0x71b   : > { %v1112_v6 = vpop.f32.mrf.mxu3 }
 0x71c   : > { %v1775_v7 = vpack.i.bf16 %v1112_v6, %v855_v58  ;;  %1781 = vrot.lane.b32.xlu1 %v1780_v5, %s2070_s12 }
 0x71e   : > { %1776 = vrot.lane.b32.xlu0 %v1775_v7, %s2071_s28 }
 0x721   : > { %v1175_v8 = vpop.f32.mrf.mxu1 }
 0x722   : > { %v1276_v8 = vperm.slane %v2368_v42, 4 }
 0x723   : > { %v1114_v9 = vpop.f32.mrf.mxu3  ;;  %v1772_v14 = vpop.permute.xlu2 %1771 }
 0x724   : > { %v1774_v15 = vunpack.i.h.bf16 %v1772_v14  ;;  %v1773_v17 = vunpack.i.l.bf16 %v1772_v14 }
 0x726   : > { %v1189_v22 = vsel %vm690_vm10, %v990_v63, %v1774_v15  ;;  %v927_v23 = vsel %vm690_vm10, %v2440_v13, %v1773_v17 }
 0x78e   : > { %v1782_v18 = vpop.permute.xlu1 %1781 }
 0x78f   : > { %v1784_v24 = vunpack.i.h.bf16 %v1782_v18  ;;  %v1783_v25 = vunpack.i.l.bf16 %v1782_v18  ;;  %v1678_v18 = vld [vmem:[%s2339_s30 + $0x18] sm:$0xff] }
 0x790   : > { %v1777_v19 = vpop.permute.xlu0 %1776  ;;  %1361 = vmatpush.bf16.msra.mxu0 %v1678_v18 }
 0x791   : > { %v1779_v20 = vunpack.i.h.bf16 %v1777_v19  ;;  %v1778_v21 = vunpack.i.l.bf16 %v1777_v19  ;;  %v1677_v19 = vld [vmem:[%s2339_s30 + $0x10] sm:$0xff] }
 0x793   : > { %v1190_v26 = vsel %vm928_vm11, %v1189_v22, %v1779_v20  ;;  %v929_v28 = vsel %vm928_vm11, %v927_v23, %v1778_v21  ;;  %v1676_v20 = vld [vmem:[%s2339_s30 + $0x8] sm:$0xff]  ;;  %v1675_v21 = vld [vmem:[%s2339_s30] sm:$0xff] }
 0x794   : > { %v931_v29 = vsel %vm930_vm12, %v929_v28, %v1783_v25  ;;  %v1191_v16 = vsel %vm930_vm12, %v1190_v26, %v1784_v24  ;;  %1362 = vmatpush.bf16.msra.mxu0 %v1677_v19  ;;  %v1786_v23 = vld [vmem:[%s528_s26] ss:$0 sm:$0xff] }
 0x795   : > { %v1192_v30 = vpack.c.bf16 %v1191_v16, %v931_v29 }
 0x797   : > { %1633 = vmatmul.msk.bf16.vlgmr.msra.gmra.mxu2 %vm547_vm1, %v1192_v30  ;;  %v1328_v30 = vperm.slane %v2368_v42, 5 }
 0x798   : > { %1363 = vmatpush.bf16.msra.mxu0 %v1676_v20 }
 0x79c   : > { %1364 = vmatpush.bf16.msra.mxu0 %v1675_v21 }
 0x81a   : > { %v1222_v32 = vpop.f32.mrf.mxu2 }
 0x81b   : > { %v1223_v33 = vadd.f32 %v1222_v32, %v1197_v31 }
 0x81d   : > { %v2508_v34 = vadd.f32 %v1223_v33, %v2347_v2 }
 0x81f   : > { %v1229_v35 = vsel %vm547_vm1, %v2508_v34, 0.0 }
 0x820   : > { %1230 = vadd.xlane.f32.xlu2 %v1229_v35 }
 0x822   : > { %v1224_v13 = vpop.f32.mrf.mxu2 }
 0x823   : > { %v1225_v36 = vadd.f32 %v1224_v13, %v1197_v31 }
 0x825   : > { %v2513_v37 = vadd.f32 %v1225_v36, %v2351_v4 }
 0x827   : > { %v1232_v38 = vsel %vm547_vm1, %v2513_v37, 0.0 }
 0x828   : > { %1233 = vadd.xlane.f32.xlu0 %v1232_v38 }
 0x893   : > { %v1231_v39 = vpop.xlane.xlu2 %1230 }
 0x894   : > { %v1235_v40 = vmul.f32 %v1231_v39, %v2355_v12 }
 0x896   : > { %v1237_v2 = vsub.f32 %v2508_v34, %v1235_v40 }
 0x898   : > { %v1239_v27 = vmul.f32 %v1237_v2, %v1237_v2 }
 0x89a   : > { %v1241_v41 = vsel %vm547_vm1, %v1239_v27, 0.0 }
 0x89b   : > { %v1234_v43 = vpop.xlane.xlu0 %1233  ;;  %1242 = vadd.xlane.f32.xlu1 %v1241_v41 }
 0x89c   : > { %v1236_v44 = vmul.f32 %v1234_v43, %v2355_v12 }
 0x89e   : > { %v1238_v4 = vsub.f32 %v2513_v37, %v1236_v44 }
 0x8a0   : > { %v1240_v45 = vmul.f32 %v1238_v4, %v1238_v4 }
 0x8a2   : > { %v1244_v46 = vsel %vm547_vm1, %v1240_v45, 0.0 }
 0x8a3   : > { %1245 = vadd.xlane.f32.xlu2 %v1244_v46 }
 0x90e   : > { %v1243_v49 = vpop.xlane.xlu1 %1242 }
 0x90f   : > { %v1247_v0 = vmul.f32 %v1243_v49, %v2355_v12 }
 0x911   : > { %v1249_v50 = vadd.f32 1e-05, %v1247_v0 }
 0x913   : > { %1825 = vrsqrt.f32 %v1249_v50  ;;  %vm1257_vm14 = vweird.f32 %v1249_v50 }
 0x916   : > { %v1246_v51 = vpop.xlane.xlu2 %1245 }
 0x917   : > { %v1248_v52 = vmul.f32 %v1246_v51, %v2355_v12  ;;  %v1273_v12 = vperm.slane %v2368_v42, 3 }
 0x919   : > { %v1826_v53 = vpop.eup %1825  ;;  %v1250_v54 = vadd.f32 1e-05, %v1248_v52 }
 0x91a   : > { %v1252_v55 = vmul.f32 %v1826_v53, %v1249_v50  ;;  %vm1258_vm13 = vweird.f32 %v1826_v53 }
 0x91b   : > { %1827 = vrsqrt.f32 %v1250_v54  ;;  %vm1259_vm15 = vmor %vm1257_vm14, %vm1258_vm13  ;;  %vm1267_vm2 = vweird.f32 %v1250_v54 }
 0x91c   : > { %v1253_v56 = vmul.f32 %v1826_v53, %v1252_v55 }
 0x91e   : > { %v1254_v57 = vmul.f32 0.5, %v1253_v56 }
 0x920   : > { %v1255_v58 = vsub.f32 1.5, %v1254_v57 }
 0x921   : > { %v1828_v59 = vpop.eup %1827 }
 0x922   : > { %v1256_v60 = vmul.f32 %v1826_v53, %v1255_v58  ;;  %v1262_v61 = vmul.f32 %v1828_v59, %v1250_v54  ;;  %vm1268_vm0 = vweird.f32 %v1828_v59 }
 0x923   : > { %vm1269_vm3 = vmor %vm1267_vm2, %vm1268_vm0 }
 0x924   : > { %v1263_v62 = vmul.f32 %v1828_v59, %v1262_v61  ;;  %v1260_v63 = vsel %vm1259_vm15, %v1826_v53, %v1256_v60 }
 0x925   : > { %v1271_v5 = vmul.f32 %v1260_v63, %v1237_v2 }
 0x926   : > { %v1264_v1 = vmul.f32 0.5, %v1263_v62 }
 0x927   : > { %v1274_v9 = vmul.f32 %v1273_v12, %v1271_v5 }
 0x928   : > { %v1265_v3 = vsub.f32 1.5, %v1264_v1 }
 0x929   : > { %v1277_v14 = vadd.f32 %v1276_v8, %v1274_v9 }
 0x92a   : > { %v1266_v6 = vmul.f32 %v1828_v59, %v1265_v3 }
 0x92c   : > { %v1270_v7 = vsel %vm1269_vm3, %v1828_v59, %v1266_v6 }
 0x92d   : > { %v1272_v10 = vmul.f32 %v1270_v7, %v1238_v4 }
 0x92f   : > { %v1275_v11 = vmul.f32 %v1273_v12, %v1272_v10 }
 0x931   : > { %v1278_v15 = vadd.f32 %v1276_v8, %v1275_v11 }
 0x933   : > { %v1279_v17 = vpack.c.bf16 %v1278_v15, %v1277_v14 }
 0x935   : > { %1642 = vmatmul.msk.bf16.vlgmr.msra.gmra.mxu3 %vm547_vm1, %v1279_v17 }
 0x9b8   : > { %v1312_v22 = vpop.f32.mrf.mxu3 }
 0x9b9   : > { %v1313_v24 = vadd.f32 %v1786_v23, %v1312_v22 }
 0x9bb   : > { %v1317_v28 = vmax.f32 %v1313_v24, 0.0 }
 0x9c0   : > { %v1314_v25 = vpop.f32.mrf.mxu3 }
 0x9c1   : > { %v1315_v26 = vadd.f32 %v1786_v23, %v1314_v25 }
 0x9c3   : > { %v1318_v29 = vmax.f32 %v1315_v26, 0.0 }
 0x9c5   : > { %v1319_v16 = vpack.c.bf16 %v1318_v29, %v1317_v28 }
 0x9c7   : > { %1659 = vmatmul.msk.bf16.vlgmr.msra.gmra.mxu0 %vm1353_vm4, %v1319_v16 }
 0xa44   : > { %v1366_v31 = vpop.f32.mrf.mxu0 }
 0xa45   : > { %v1367_v32 = vadd.f32 %v1366_v31, %v1328_v30 }
 0xa47   : > { %v1371_v33 = vadd.f32 %v1367_v32, %v2508_v34 }
 0xa49   : > { %1373 = vst.msk [vmem:[#allocation2] sm:$0xff] %vm547_vm1, %v1371_v33 }
 0xa4a   : > { %1375 = vst.msk [vmem:[%s2343_s20] sm:$0xff] %vm547_vm1, %v1371_v33 }
 0xa4c   : > { %v1368_v35 = vpop.f32.mrf.mxu0 }
 0xa4d   : > { %v1369_v13 = vadd.f32 %v1368_v35, %v1328_v30 }
 0xa4f   : > { %v1372_v42 = vadd.f32 %v1369_v13, %v2513_v37 }
 0xa51   : > { %1374 = vst.msk [vmem:[#allocation2 + $0x8] sm:$0xff] %vm547_vm1, %v1372_v42 }
 0xa52   : > { %1376 = vst.msk [vmem:[%s2343_s20 + $0x8] sm:$0xff] %vm547_vm1, %v1372_v42 }
 0xa53   : > { %2006 = shalt.err (!%p2003_p8)
}
 0xa54   : > { %s2072_s24 = smov 128  }
 0xa55   : > { %1692 = dma.vmem_to_hbm [thread:$0]  (%p2166_p6), %s1391_s9, 256, %s1393_s22, %s1378_s13, %s2072_s24, %s2072_s24, %s2069_s25  }
 0xa56 PF: > { %s2629_s20 = sld [smem:[#allocation17_spill]] }
 0xa57   : > { %s2631_s12 = sld [smem:[#allocation19_spill]] }
 0xa5c   : > { %s1407_s28 = sand.u32 1, %s2629_s20  }
 0xa5d   : > { %p2632_p10 = scmp.ge.s32.totalorder %s2631_s12, 2  ;;  %s1408_s17 = scalar_lea.sflag [#allocation5], %s1407_s28 }
 0xa5f   : > { %p1712_p5 = pnand %p2632_p10, %p2176_p11 }
 0xa61   : > { %p1713_p7 = pneg %p1712_p5 }
 0xa63   : > { %2036 = dma.done.wait (%p1713_p7), %s1408_s17, 256  }
 0xa64   : > { %2038 = vsyncadd (%p1713_p7), %s1408_s17, 4294967040  ;;  %s2633_s12 = sld [smem:[#allocation20_spill]]  ;;  %s2636_s30 = smov %s2045_s10 }
 0xa65   : > { %s2634_s29 = sld [smem:[#allocation18_spill]] }
 0xa66   : > { %s2635_s11 = sld [smem:[#allocation21_spill]] }
 0xa6a   : > { %p26_p12 = scmp.ge.s32.totalorder %s2633_s12, 4  }
 0xa6b   : > { %s2637_s10 = smov %s2634_s29 }
 0xa6c   :  { %28 = sbr.rel (!%p26_p12) target bundleno = 13 (0xd), region = 161 }
 0xa71   :  { %1414 = vsyncpa [#allocation4], 1 }
 0xa72   :  { %1416 = vsyncpa [#allocation4 + $0x1], 1 }
 0xa73   :  { %1417 = vsyncpa [#allocation7], 1 }
 0xa74   :  { %1419 = vsyncpa [#allocation7 + $0x1], 1 }
 0xa75   :  { %1420 = vsyncpa [#allocation10], 1 }
 0xa76   :  { %1422 = vsyncpa [#allocation10 + $0x1], 1 }
 0xa77   :  { %1423 = vsyncpa [#allocation5], 1 }
 0xa78   :  { %1425 = vsyncpa [#allocation5 + $0x1], 1 }

</bundles_post_ra>
